<compile_context>
chip_gen: v7x
topology: tpu7x:2x2x1
jax: 0.10.0
libtpu: 0.0.40
codegen_flags: <defaults>
</compile_context>

<pallas_src>
import jax
import jax.numpy as jnp
from jax.experimental import pallas as pl
from jax.experimental.pallas import tpu as pltpu


# Hidden widths after padding layer 6 from 64 -> 128 lanes.
_HIDDEN = (128, 256, 512, 256, 128, 128)
_H6_RAW = 64
_H6_PAD = 128


def _round_up(x, m):
    return -(-x // m) * m


# ----------------------------------------------------------------------------
# Pallas kernel: full forward pass for one batch tile (fused head output).
# ----------------------------------------------------------------------------
def _mlp_kernel(
    x_ref,
    w1_ref, b1_ref,
    w2_ref, b2_ref,
    w3_ref, b3_ref,
    w4_ref, b4_ref,
    w5_ref, b5_ref,
    w6_ref, b6_ref,
    wh_ref, bh_ref,
    head_out_ref,
):
    def layer(h, w_ref, b_ref):
        y = jnp.dot(h, w_ref[...], preferred_element_type=jnp.float32) + b_ref[...]
        return jnp.tanh(y).astype(jnp.bfloat16)

    h = x_ref[...].astype(jnp.bfloat16)
    h = layer(h, w1_ref, b1_ref)   # (tb, 128)
    h = layer(h, w2_ref, b2_ref)   # (tb, 256)
    h = layer(h, w3_ref, b3_ref)   # (tb, 512)
    h = layer(h, w4_ref, b4_ref)   # (tb, 256)
    h = layer(h, w5_ref, b5_ref)   # (tb, 128)
    h = layer(h, w6_ref, b6_ref)   # (tb, 128) -- lanes 64..127 are exact zeros

    # Fused (interval | delivery_time) head, padded to a lane-dense width.
    head_out_ref[...] = (
        jnp.dot(h, wh_ref[...], preferred_element_type=jnp.float32) + bh_ref[...]
    ).astype(head_out_ref.dtype)


# ----------------------------------------------------------------------------
# Batch-tile selection: big tiles, >= 2 grid steps when the batch allows
# (keeps both v7x TensorCores busy), capped at 512 rows (VMEM-safe on v7x).
# ----------------------------------------------------------------------------
def _pick_tile_b(batch, max_tile=512):
    bp = _round_up(max(batch, 1), 8)
    if bp <= 8:
        return 8
    if bp <= 2 * max_tile:
        return _round_up(pl.cdiv(bp, 2), 8)   # exactly 2 grid steps
    return max_tile


# ----------------------------------------------------------------------------
# Wrapper
# ----------------------------------------------------------------------------
def interval_and_time_predictor(x, params, *, tile_b=None):
    """x: (B, input_size) float32.  params: dict of (W, b) pairs (see init_params).

    Returns (interval_logits (B, num_intervals), time_logits (B, num_categories)).
    """
    B, input_size = x.shape
    num_intervals = params["w_int"].shape[1]
    num_categories = params["w_time"].shape[1]
    head_raw = num_intervals + num_categories
    head_w = _round_up(head_raw, 128)          # lane-dense fused head width

    # ---- pack weights: bf16, layer-6 + fused head padded to 128 lanes ----
    bf16 = jnp.bfloat16
    w1 = params["w1"].astype(bf16)
    w2 = params["w2"].astype(bf16)
    w3 = params["w3"].astype(bf16)
    w4 = params["w4"].astype(bf16)
    w5 = params["w5"].astype(bf16)
    w6 = jnp.pad(params["w6"], ((0, 0), (0, _H6_PAD - _H6_RAW))).astype(bf16)
    b6 = jnp.pad(params["b6"], ((0, 0), (0, _H6_PAD - _H6_RAW)))
    wh = jnp.concatenate([params["w_int"], params["w_time"]], axis=1)     # (64, ni+nc)
    wh = jnp.pad(wh, ((0, _H6_PAD - _H6_RAW), (0, head_w - head_raw))).astype(bf16)
    bh = jnp.concatenate([params["b_int"], params["b_time"]], axis=1)
    bh = jnp.pad(bh, ((0, 0), (0, head_w - head_raw)))

    weight_args = [
        w1, params["b1"],
        w2, params["b2"],
        w3, params["b3"],
        w4, params["b4"],
        w5, params["b5"],
        w6, b6,
        wh, bh,
    ]

    # ---- batch tiling ----
    if tile_b is None:
        tile_b = _pick_tile_b(B)
    tile_b = max(8, _round_up(tile_b, 8))
    pad_b = (-B) % tile_b
    if pad_b:
        x = jnp.pad(x, ((0, pad_b), (0, 0)))
    Bp = x.shape[0]
    grid = (Bp // tile_b,)

    in_specs = [pl.BlockSpec((tile_b, input_size), lambda i: (i, 0))]
    # Constant-index full-array weight blocks (resident across all grid steps).
    in_specs += [pl.BlockSpec(a.shape, lambda i: (0, 0)) for a in weight_args]

    out_shape = jax.ShapeDtypeStruct((Bp, head_w), jnp.float32)
    out_spec = pl.BlockSpec((tile_b, head_w), lambda i: (i, 0))

    # ---- cost estimate (advisory) ----
    dims = [input_size] + list(_HIDDEN) + [head_w]
    flops = 2 * Bp * sum(a * b for a, b in zip(dims[:-1], dims[1:]))
    transcendentals = Bp * sum(_HIDDEN)
    bytes_accessed = (
        x.size * 4
        + sum(int(a.size) * a.dtype.itemsize for a in weight_args)
        + Bp * head_w * 4
    )

    f = pl.pallas_call(
        _mlp_kernel,
        grid_spec=pltpu.PrefetchScalarGridSpec(
            num_scalar_prefetch=0,
            grid=grid,
            in_specs=in_specs,
            out_specs=out_spec,
        ),
        out_shape=out_shape,
        compiler_params=pltpu.CompilerParams(
            dimension_semantics=("parallel",),
        ),
        cost_estimate=pl.CostEstimate(
            flops=flops,
            transcendentals=transcendentals,
            bytes_accessed=bytes_accessed,
        ),
    )

    head = f(x, *weight_args)
    interval_logits = head[:B, :num_intervals]
    time_logits = head[:B, num_intervals:head_raw]
    return interval_logits, time_logits


# ----------------------------------------------------------------------------
# Deterministic parameter initialization (PyTorch-style uniform(-k, k),
# k = 1/sqrt(fan_in)), weights stored as (in, out).
# ----------------------------------------------------------------------------
def init_params(key, input_size, num_intervals, num_categories):
    dims = [
        ("1", input_size, 128),
        ("2", 128, 256),
        ("3", 256, 512),
        ("4", 512, 256),
        ("5", 256, 128),
        ("6", 128, 64),
        ("_int", 64, num_intervals),
        ("_time", 64, num_categories),
    ]
    params = {}
    for name, fan_in, fan_out in dims:
        key, kw, kb = jax.random.split(key, 3)
        bound = 1.0 / (fan_in ** 0.5)
        params["w" + name] = jax.random.uniform(
            kw, (fan_in, fan_out), jnp.float32, -bound, bound
        )
        # Keep bias 2D (1, fan_out) so it broadcasts cleanly in the kernel.
        params["b" + name] = jax.random.uniform(
            kb, (1, fan_out), jnp.float32, -bound, bound
        )
    return params


# ----------------------------------------------------------------------------
# Pure-JAX reference mirroring the kernel's bf16-input / f32-accumulate math.
# ----------------------------------------------------------------------------
def reference_forward(x, p):
    bf16 = jnp.bfloat16

    def layer(h, w, b):
        y = jnp.dot(h, w.astype(bf16), preferred_element_type=jnp.float32) + b
        return jnp.tanh(y).astype(bf16)

    h = x.astype(bf16)
    h = layer(h, p["w1"], p["b1"])
    h = layer(h, p["w2"], p["b2"])
    h = layer(h, p["w3"], p["b3"])
    h = layer(h, p["w4"], p["b4"])
    h = layer(h, p["w5"], p["b5"])
    h = layer(h, p["w6"], p["b6"])
    iv = jnp.dot(h, p["w_int"].astype(bf16), preferred_element_type=jnp.float32) + p["b_int"]
    tm = jnp.dot(h, p["w_time"].astype(bf16), preferred_element_type=jnp.float32) + p["b_time"]
    return iv, tm


if __name__ == "__main__":
    key = jax.random.PRNGKey(0)
    kx, kp = jax.random.split(key)

    batch = 16
    input_size = 32
    num_intervals = 16
    num_categories = 8

    x = jax.random.normal(kx, (batch, input_size), jnp.float32)
    params = init_params(kp, input_size, num_intervals, num_categories)

    interval_logits, time_logits = interval_and_time_predictor(x, params)
    jax.block_until_ready((interval_logits, time_logits))

    ref_interval, ref_time = reference_forward(x, params)
    assert interval_logits.shape == (batch, num_intervals)
    assert time_logits.shape == (batch, num_categories)
    assert jnp.allclose(interval_logits, ref_interval, atol=2e-2, rtol=2e-2)
    assert jnp.allclose(time_logits, ref_time, atol=2e-2, rtol=2e-2)

    print("KERNEL_OK")
</pallas_src>

<mosaic_0001>
module attributes {stable_mosaic.version = 11 : i64} {
  func.func @_mlp_kernel(%arg0: i32, %arg1: memref<8x32xf32, #tpu.memory_space<vmem>>, %arg2: memref<32x128xbf16, #tpu.memory_space<vmem>>, %arg3: memref<1x128xf32, #tpu.memory_space<vmem>>, %arg4: memref<128x256xbf16, #tpu.memory_space<vmem>>, %arg5: memref<1x256xf32, #tpu.memory_space<vmem>>, %arg6: memref<256x512xbf16, #tpu.memory_space<vmem>>, %arg7: memref<1x512xf32, #tpu.memory_space<vmem>>, %arg8: memref<512x256xbf16, #tpu.memory_space<vmem>>, %arg9: memref<1x256xf32, #tpu.memory_space<vmem>>, %arg10: memref<256x128xbf16, #tpu.memory_space<vmem>>, %arg11: memref<1x128xf32, #tpu.memory_space<vmem>>, %arg12: memref<128x128xbf16, #tpu.memory_space<vmem>>, %arg13: memref<1x128xf32, #tpu.memory_space<vmem>>, %arg14: memref<128x128xbf16, #tpu.memory_space<vmem>>, %arg15: memref<1x128xf32, #tpu.memory_space<vmem>>, %arg16: memref<8x128xf32, #tpu.memory_space<vmem>>) attributes {dimension_semantics = [#tpu.dimension_semantics<parallel>], iteration_bounds = array<i64: 2>, scalar_prefetch = 0 : i64, scratch_operands = 0 : i64, tpu.core_type = #tpu.core_type<tc>, window_params = [{transform_indices = @transform_0, window_bounds = array<i64: 8, 32>}, {pipeline_mode = #tpu.pipeline_mode<synchronous>, transform_indices = @transform_1, window_bounds = array<i64: 32, 128>}, {pipeline_mode = #tpu.pipeline_mode<synchronous>, transform_indices = @transform_2, window_bounds = array<i64: 1, 128>}, {pipeline_mode = #tpu.pipeline_mode<synchronous>, transform_indices = @transform_3, window_bounds = array<i64: 128, 256>}, {pipeline_mode = #tpu.pipeline_mode<synchronous>, transform_indices = @transform_4, window_bounds = array<i64: 1, 256>}, {pipeline_mode = #tpu.pipeline_mode<synchronous>, transform_indices = @transform_5, window_bounds = array<i64: 256, 512>}, {pipeline_mode = #tpu.pipeline_mode<synchronous>, transform_indices = @transform_6, window_bounds = array<i64: 1, 512>}, {pipeline_mode = #tpu.pipeline_mode<synchronous>, transform_indices = @transform_7, window_bounds = array<i64: 512, 256>}, {pipeline_mode = #tpu.pipeline_mode<synchronous>, transform_indices = @transform_8, window_bounds = array<i64: 1, 256>}, {pipeline_mode = #tpu.pipeline_mode<synchronous>, transform_indices = @transform_9, window_bounds = array<i64: 256, 128>}, {pipeline_mode = #tpu.pipeline_mode<synchronous>, transform_indices = @transform_10, window_bounds = array<i64: 1, 128>}, {pipeline_mode = #tpu.pipeline_mode<synchronous>, transform_indices = @transform_11, window_bounds = array<i64: 128, 128>}, {pipeline_mode = #tpu.pipeline_mode<synchronous>, transform_indices = @transform_12, window_bounds = array<i64: 1, 128>}, {pipeline_mode = #tpu.pipeline_mode<synchronous>, transform_indices = @transform_13, window_bounds = array<i64: 128, 128>}, {pipeline_mode = #tpu.pipeline_mode<synchronous>, transform_indices = @transform_14, window_bounds = array<i64: 1, 128>}, {transform_indices = @transform_15, window_bounds = array<i64: 8, 128>}]} {
    %c0 = arith.constant 0 : index
    %c0_0 = arith.constant 0 : index
    %0 = vector.load %arg1[%c0, %c0_0] : memref<8x32xf32, #tpu.memory_space<vmem>>, vector<8x32xf32>
    %1 = arith.truncf %0 : vector<8x32xf32> to vector<8x32xbf16>
    %c0_1 = arith.constant 0 : index
    %c0_2 = arith.constant 0 : index
    %2 = vector.load %arg2[%c0_1, %c0_2] : memref<32x128xbf16, #tpu.memory_space<vmem>>, vector<32x128xbf16>
    %cst = arith.constant dense<0.000000e+00> : vector<8x128xf32>
    %3 = tpu.matmul %1, %2, %cst {dimension_numbers = #tpu.dot_dimension_numbers<[1], [0], [0], [1], [0, 0, 1, 1], [], []>} : vector<8x32xbf16>, vector<32x128xbf16>, vector<8x128xf32> -> vector<8x128xf32>
    %c0_3 = arith.constant 0 : index
    %c0_4 = arith.constant 0 : index
    %4 = vector.load %arg3[%c0_3, %c0_4] : memref<1x128xf32, #tpu.memory_space<vmem>>, vector<1x128xf32>
    %5 = vector.broadcast %4 : vector<1x128xf32> to vector<8x128xf32>
    %6 = arith.addf %3, %5 : vector<8x128xf32>
    %7 = math.tanh %6 : vector<8x128xf32>
    %8 = arith.truncf %7 : vector<8x128xf32> to vector<8x128xbf16>
    %c0_5 = arith.constant 0 : index
    %c0_6 = arith.constant 0 : index
    %9 = vector.load %arg4[%c0_5, %c0_6] : memref<128x256xbf16, #tpu.memory_space<vmem>>, vector<128x256xbf16>
    %cst_7 = arith.constant dense<0.000000e+00> : vector<8x256xf32>
    %10 = tpu.matmul %8, %9, %cst_7 {dimension_numbers = #tpu.dot_dimension_numbers<[1], [0], [0], [1], [0, 0, 1, 1], [], []>} : vector<8x128xbf16>, vector<128x256xbf16>, vector<8x256xf32> -> vector<8x256xf32>
    %c0_8 = arith.constant 0 : index
    %c0_9 = arith.constant 0 : index
    %11 = vector.load %arg5[%c0_8, %c0_9] : memref<1x256xf32, #tpu.memory_space<vmem>>, vector<1x256xf32>
    %12 = vector.broadcast %11 : vector<1x256xf32> to vector<8x256xf32>
    %13 = arith.addf %10, %12 : vector<8x256xf32>
    %14 = math.tanh %13 : vector<8x256xf32>
    %15 = arith.truncf %14 : vector<8x256xf32> to vector<8x256xbf16>
    %c0_10 = arith.constant 0 : index
    %c0_11 = arith.constant 0 : index
    %16 = vector.load %arg6[%c0_10, %c0_11] : memref<256x512xbf16, #tpu.memory_space<vmem>>, vector<256x512xbf16>
    %cst_12 = arith.constant dense<0.000000e+00> : vector<8x512xf32>
    %17 = tpu.matmul %15, %16, %cst_12 {dimension_numbers = #tpu.dot_dimension_numbers<[1], [0], [0], [1], [0, 0, 1, 1], [], []>} : vector<8x256xbf16>, vector<256x512xbf16>, vector<8x512xf32> -> vector<8x512xf32>
    %c0_13 = arith.constant 0 : index
    %c0_14 = arith.constant 0 : index
    %18 = vector.load %arg7[%c0_13, %c0_14] : memref<1x512xf32, #tpu.memory_space<vmem>>, vector<1x512xf32>
    %19 = vector.broadcast %18 : vector<1x512xf32> to vector<8x512xf32>
    %20 = arith.addf %17, %19 : vector<8x512xf32>
    %21 = math.tanh %20 : vector<8x512xf32>
    %22 = arith.truncf %21 : vector<8x512xf32> to vector<8x512xbf16>
    %c0_15 = arith.constant 0 : index
    %c0_16 = arith.constant 0 : index
    %23 = vector.load %arg8[%c0_15, %c0_16] : memref<512x256xbf16, #tpu.memory_space<vmem>>, vector<512x256xbf16>
    %cst_17 = arith.constant dense<0.000000e+00> : vector<8x256xf32>
    %24 = tpu.matmul %22, %23, %cst_17 {dimension_numbers = #tpu.dot_dimension_numbers<[1], [0], [0], [1], [0, 0, 1, 1], [], []>} : vector<8x512xbf16>, vector<512x256xbf16>, vector<8x256xf32> -> vector<8x256xf32>
    %c0_18 = arith.constant 0 : index
    %c0_19 = arith.constant 0 : index
    %25 = vector.load %arg9[%c0_18, %c0_19] : memref<1x256xf32, #tpu.memory_space<vmem>>, vector<1x256xf32>
    %26 = vector.broadcast %25 : vector<1x256xf32> to vector<8x256xf32>
    %27 = arith.addf %24, %26 : vector<8x256xf32>
    %28 = math.tanh %27 : vector<8x256xf32>
    %29 = arith.truncf %28 : vector<8x256xf32> to vector<8x256xbf16>
    %c0_20 = arith.constant 0 : index
    %c0_21 = arith.constant 0 : index
    %30 = vector.load %arg10[%c0_20, %c0_21] : memref<256x128xbf16, #tpu.memory_space<vmem>>, vector<256x128xbf16>
    %cst_22 = arith.constant dense<0.000000e+00> : vector<8x128xf32>
    %31 = tpu.matmul %29, %30, %cst_22 {dimension_numbers = #tpu.dot_dimension_numbers<[1], [0], [0], [1], [0, 0, 1, 1], [], []>} : vector<8x256xbf16>, vector<256x128xbf16>, vector<8x128xf32> -> vector<8x128xf32>
    %c0_23 = arith.constant 0 : index
    %c0_24 = arith.constant 0 : index
    %32 = vector.load %arg11[%c0_23, %c0_24] : memref<1x128xf32, #tpu.memory_space<vmem>>, vector<1x128xf32>
    %33 = vector.broadcast %32 : vector<1x128xf32> to vector<8x128xf32>
    %34 = arith.addf %31, %33 : vector<8x128xf32>
    %35 = math.tanh %34 : vector<8x128xf32>
    %36 = arith.truncf %35 : vector<8x128xf32> to vector<8x128xbf16>
    %c0_25 = arith.constant 0 : index
    %c0_26 = arith.constant 0 : index
    %37 = vector.load %arg12[%c0_25, %c0_26] : memref<128x128xbf16, #tpu.memory_space<vmem>>, vector<128x128xbf16>
    %cst_27 = arith.constant dense<0.000000e+00> : vector<8x128xf32>
    %38 = tpu.matmul %36, %37, %cst_27 {dimension_numbers = #tpu.dot_dimension_numbers<[1], [0], [0], [1], [0, 0, 1, 1], [], []>} : vector<8x128xbf16>, vector<128x128xbf16>, vector<8x128xf32> -> vector<8x128xf32>
    %c0_28 = arith.constant 0 : index
    %c0_29 = arith.constant 0 : index
    %39 = vector.load %arg13[%c0_28, %c0_29] : memref<1x128xf32, #tpu.memory_space<vmem>>, vector<1x128xf32>
    %40 = vector.broadcast %39 : vector<1x128xf32> to vector<8x128xf32>
    %41 = arith.addf %38, %40 : vector<8x128xf32>
    %42 = math.tanh %41 : vector<8x128xf32>
    %43 = arith.truncf %42 : vector<8x128xf32> to vector<8x128xbf16>
    %c0_30 = arith.constant 0 : index
    %c0_31 = arith.constant 0 : index
    %44 = vector.load %arg14[%c0_30, %c0_31] : memref<128x128xbf16, #tpu.memory_space<vmem>>, vector<128x128xbf16>
    %cst_32 = arith.constant dense<0.000000e+00> : vector<8x128xf32>
    %45 = tpu.matmul %43, %44, %cst_32 {dimension_numbers = #tpu.dot_dimension_numbers<[1], [0], [0], [1], [0, 0, 1, 1], [], []>} : vector<8x128xbf16>, vector<128x128xbf16>, vector<8x128xf32> -> vector<8x128xf32>
    %c0_33 = arith.constant 0 : index
    %c0_34 = arith.constant 0 : index
    %46 = vector.load %arg15[%c0_33, %c0_34] : memref<1x128xf32, #tpu.memory_space<vmem>>, vector<1x128xf32>
    %47 = vector.broadcast %46 : vector<1x128xf32> to vector<8x128xf32>
    %48 = arith.addf %45, %47 : vector<8x128xf32>
    %c0_35 = arith.constant 0 : index
    %c0_36 = arith.constant 0 : index
    %49 = vector.load %arg16[%c0_35, %c0_36] : memref<8x128xf32, #tpu.memory_space<vmem>>, vector<8x128xf32>
    tpu.vector_store %arg16[%c0_35, %c0_36], %48 {strides = array<i32>} : memref<8x128xf32, #tpu.memory_space<vmem>>, vector<8x128xf32>,
    return
  }
  func.func @transform_0(%arg0: i32) -> (i32, i32) {
    %c0_i32 = arith.constant 0 : i32
    %c0_i32_0 = arith.constant 0 : i32
    return %arg0, %c0_i32 : i32, i32
  }
  func.func @transform_1(%arg0: i32) -> (i32, i32) {
    %c0_i32 = arith.constant 0 : i32
    %c0_i32_0 = arith.constant 0 : i32
    %c0_i32_1 = arith.constant 0 : i32
    return %c0_i32, %c0_i32_0 : i32, i32
  }
  func.func @transform_2(%arg0: i32) -> (i32, i32) {
    %c0_i32 = arith.constant 0 : i32
    %c0_i32_0 = arith.constant 0 : i32
    %c0_i32_1 = arith.constant 0 : i32
    return %c0_i32, %c0_i32_0 : i32, i32
  }
  func.func @transform_3(%arg0: i32) -> (i32, i32) {
    %c0_i32 = arith.constant 0 : i32
    %c0_i32_0 = arith.constant 0 : i32
    %c0_i32_1 = arith.constant 0 : i32
    return %c0_i32, %c0_i32_0 : i32, i32
  }
  func.func @transform_4(%arg0: i32) -> (i32, i32) {
    %c0_i32 = arith.constant 0 : i32
    %c0_i32_0 = arith.constant 0 : i32
    %c0_i32_1 = arith.constant 0 : i32
    return %c0_i32, %c0_i32_0 : i32, i32
  }
  func.func @transform_5(%arg0: i32) -> (i32, i32) {
    %c0_i32 = arith.constant 0 : i32
    %c0_i32_0 = arith.constant 0 : i32
    %c0_i32_1 = arith.constant 0 : i32
    return %c0_i32, %c0_i32_0 : i32, i32
  }
  func.func @transform_6(%arg0: i32) -> (i32, i32) {
    %c0_i32 = arith.constant 0 : i32
    %c0_i32_0 = arith.constant 0 : i32
    %c0_i32_1 = arith.constant 0 : i32
    return %c0_i32, %c0_i32_0 : i32, i32
  }
  func.func @transform_7(%arg0: i32) -> (i32, i32) {
    %c0_i32 = arith.constant 0 : i32
    %c0_i32_0 = arith.constant 0 : i32
    %c0_i32_1 = arith.constant 0 : i32
    return %c0_i32, %c0_i32_0 : i32, i32
  }
  func.func @transform_8(%arg0: i32) -> (i32, i32) {
    %c0_i32 = arith.constant 0 : i32
    %c0_i32_0 = arith.constant 0 : i32
    %c0_i32_1 = arith.constant 0 : i32
    return %c0_i32, %c0_i32_0 : i32, i32
  }
  func.func @transform_9(%arg0: i32) -> (i32, i32) {
    %c0_i32 = arith.constant 0 : i32
    %c0_i32_0 = arith.constant 0 : i32
    %c0_i32_1 = arith.constant 0 : i32
    return %c0_i32, %c0_i32_0 : i32, i32
  }
  func.func @transform_10(%arg0: i32) -> (i32, i32) {
    %c0_i32 = arith.constant 0 : i32
    %c0_i32_0 = arith.constant 0 : i32
    %c0_i32_1 = arith.constant 0 : i32
    return %c0_i32, %c0_i32_0 : i32, i32
  }
  func.func @transform_11(%arg0: i32) -> (i32, i32) {
    %c0_i32 = arith.constant 0 : i32
    %c0_i32_0 = arith.constant 0 : i32
    %c0_i32_1 = arith.constant 0 : i32
    return %c0_i32, %c0_i32_0 : i32, i32
  }
  func.func @transform_12(%arg0: i32) -> (i32, i32) {
    %c0_i32 = arith.constant 0 : i32
    %c0_i32_0 = arith.constant 0 : i32
    %c0_i32_1 = arith.constant 0 : i32
    return %c0_i32, %c0_i32_0 : i32, i32
  }
  func.func @transform_13(%arg0: i32) -> (i32, i32) {
    %c0_i32 = arith.constant 0 : i32
    %c0_i32_0 = arith.constant 0 : i32
    %c0_i32_1 = arith.constant 0 : i32
    return %c0_i32, %c0_i32_0 : i32, i32
  }
  func.func @transform_14(%arg0: i32) -> (i32, i32) {
    %c0_i32 = arith.constant 0 : i32
    %c0_i32_0 = arith.constant 0 : i32
    %c0_i32_1 = arith.constant 0 : i32
    return %c0_i32, %c0_i32_0 : i32, i32
  }
  func.func @transform_15(%arg0: i32) -> (i32, i32) {
    %c0_i32 = arith.constant 0 : i32
    %c0_i32_0 = arith.constant 0 : i32
    return %arg0, %c0_i32 : i32, i32
  }
}

</mosaic_0001>

<bundles_post_ra>
// kernel: tpu_custom_call.1
= control target key start
LH: loop header
LB: loop body
LE: loop exit
PB: predicated region body
PF: predicated region fallthrough
CT: control target
= control target key end

     0   :  { %s3905_s0 = inlined_call_operand.hbm [shape: f32[16,32], index: 0, kind: input, shape index: {}]   ;;  %s3906_s1 = inlined_call_operand.hbm [shape: bf16[32,128], index: 1, kind: input, shape index: {}]   ;;  %s3907_s2 = inlined_call_operand.vmem [shape: f32[1,128], index: 2, kind: input, shape index: {}]   ;;  %s3908_s3 = inlined_call_operand.hbm [shape: bf16[128,256], index: 3, kind: input, shape index: {}]   ;;  %s3909_s4 = inlined_call_operand.vmem [shape: f32[1,256], index: 4, kind: input, shape index: {}]   ;;  %s3910_s5 = inlined_call_operand.hbm [shape: bf16[256,512], index: 5, kind: input, shape index: {}]   ;;  %s3911_s6 = inlined_call_operand.vmem [shape: f32[1,512], index: 6, kind: input, shape index: {}]   ;;  %s3912_s7 = inlined_call_operand.hbm [shape: bf16[512,256], index: 7, kind: input, shape index: {}]   ;;  %s3913_s8 = inlined_call_operand.vmem [shape: f32[1,256], index: 8, kind: input, shape index: {}]   ;;  %s3914_s9 = inlined_call_operand.hbm [shape: bf16[256,128], index: 9, kind: input, shape index: {}]   ;;  %s3915_s10 = inlined_call_operand.vmem [shape: f32[1,128], index: 10, kind: input, shape index: {}]   ;;  %s3916_s11 = inlined_call_operand.hbm [shape: bf16[128,128], index: 11, kind: input, shape index: {}]   ;;  %s3917_s12 = inlined_call_operand.vmem [shape: f32[1,128], index: 12, kind: input, shape index: {}]   ;;  %s3918_s13 = inlined_call_operand.hbm [shape: bf16[128,128], index: 13, kind: input, shape index: {}]   ;;  %s3919_s14 = inlined_call_operand.vmem [shape: f32[1,128], index: 14, kind: input, shape index: {}]   ;;  %s3920_s15 = inlined_call_operand.hbm [shape: f32[16,128], index: 15, kind: output, shape index: {}]  }
   0x1   :  { %3929 = sst [smem:[#allocation23_spill]] %s3906_s1 }
   0x2   :  { %3930 = sst [smem:[#allocation24_spill]] %s3909_s4 }
   0x3   :  { %3931 = sst [smem:[#allocation25_spill]] %s3911_s6 }
   0x4   :  { %3932 = sst [smem:[#allocation26_spill]] %s3913_s8 }
   0x5   :  { %3933 = sst [smem:[#allocation27_spill]] %s3915_s10 }
   0x6   :  { %3934 = sst [smem:[#allocation28_spill]] %s3917_s12 }
   0x7   :  { %3935 = sst [smem:[#allocation29_spill]] %s3919_s14 }
   0x8   :  { %3936 = sst [smem:[#allocation30_spill]] %s3920_s15 }
   0x9   :  { %20 = vsyncpa [#allocation3], 0 }
   0xa   :  { %22 = vsyncpa [#allocation3 + $0x1], 0 }
   0xb   :  { %23 = vsyncpa [#allocation6], 0 }
   0xc   :  { %24 = vsyncpa [#allocation9], 0 }
   0xd   :  { %25 = vsyncpa [#allocation12], 0 }
   0xe   :  { %26 = vsyncpa [#allocation15], 0 }
   0xf   :  { %27 = vsyncpa [#allocation4], 0 }
  0x10   :  { %29 = vsyncpa [#allocation4 + $0x1], 0  ;;  %s3480_s18 = smov 0   ;;  %s3482_s19 = smov 0  }
  0x11   :  { %s3484_s20 = smov 0   ;;  %s3486_s21 = smov 0  }
  0x12 LB: > { %s3382_s22 = smov [#allocation5]   ;;  %s3501_s24 = sadd.s32 4294967295, %s3380_s21   ;;  %s3380_s21 = sphi %s3486_s21, %s3970_s21   ;;  %s3376_s20 = sphi %s3484_s20, %s3969_s20   ;;  %s3372_s19 = sphi %s3482_s19, %s3968_s19   ;;  %s3368_s18 = sphi %s3480_s18, %s3967_s18  }
  0x13   : > { %s398_s23 = sshll.u32 %s3382_s22, 4  ;;  %p2369_p0 = scmp.ge.s32.totalorder %s3380_s21, 1  ;;  %s3506_s23 = int_to_ptr.vmem [resolvable:$true] %s398_s23 }
  0x14   : > { %p3924_p1 = scmp.eq.s32.totalorder %s3501_s24, 0  ;;  %p386_p2 = scmp.lt.s32.totalorder %s3380_s21, 3 }
  0x15   : > { %s3383_s26 = smov [#allocation8]   ;;  %s3384_s29 = smov [#allocation11]  }
  0x16   : > { %p3508_p3 = pnand %p2369_p0, %p386_p2  ;;  %s430_s27 = sshll.u32 %s3383_s26, 4  ;;  %s3521_s27 = int_to_ptr.vmem [resolvable:$true] %s430_s27 }
  0x17   : > { %s3523_s30 = sshll.u32 %s3384_s29, 4  ;;  %s3939_s1 = sld [smem:[#allocation23_spill]]  ;;  %s463_s30 = int_to_ptr.vmem [resolvable:$true] %s3523_s30 }
  0x18   : > { %s3937_s25 = scalar_select %p3508_p3, 1, 0 }
  0x19   : > { %p2706_p5 = pneg %p3508_p3 }
  0x1b   : > { %p3517_p6 = pnand %p2706_p5, %p3924_p1 }
  0x1d   : > { %s3072_s22 = scalar_lea.hbm %s3939_s1, 256  ;;  %p3533_p8 = pneg %p3517_p6 }
  0x1e   : > { %p3073_p7 = scmp.ne.s32.totalorder %s3939_s1, %s3072_s22  ;;  %p3079_p11 = scmp.lt.u32.totalorder %s3072_s22, %s3939_s1 }
  0x20   : > { %p3075_p9 = pnand %p3533_p8, %p3073_p7 }
  0x22   : > { %p3076_p10 = pneg %p3075_p9 }
  0x24   : > { %p3081_p12 = pnand %p3079_p11, %p3076_p10 }
  0x26   : > { %3084 = shalt.err (!%p3081_p12)
}
  0x27   : > { %s3085_s14 = scalar_lea.vmem %s3506_s23, 256  ;;  %p3093_p5 = scmp.lt.s32.totalorder %s3506_s23, %s3506_s23 }
  0x28   : > { %p3086_p13 = scmp.ne.s32.totalorder %s3506_s23, %s3085_s14  ;;  %p3094_p4 = scmp.lt.s32.totalorder %s3085_s14, %s3085_s14 }
  0x2a   : > { %p3088_p0 = pnand %p3086_p13, %p3533_p8  ;;  %p3095_p7 = por %p3094_p4, %p3093_p5 }
  0x2c   : > { %p3089_p2 = pneg %p3088_p0 }
  0x2e   : > { %p3096_p9 = pnand %p3095_p7, %p3089_p2 }
  0x30   : > { %3099 = shalt.err (!%p3096_p9)
}
  0x31   : > { %s3922_s15 = smov 64   ;;  %s3926_s12 = smov 4  }
  0x32   : > { %2709 = dma.hbm_to_vmem [thread:$0]  (!%p3517_p6), %s3939_s1, 256, %s3506_s23, [#allocation6], %s3922_s15, %s3922_s15, %s3926_s12  }
  0x33   : > { %s3100_s14 = scalar_lea.hbm %s3910_s5, 8192 }
  0x34   : > { %p3101_p4 = scmp.ne.s32.totalorder %s3910_s5, %s3100_s14  ;;  %p3107_p12 = scmp.lt.u32.totalorder %s3100_s14, %s3910_s5 }
  0x36   : > { %p3103_p10 = pnand %p3101_p4, %p3533_p8 }
  0x38   : > { %p3104_p11 = pneg %p3103_p10 }
  0x3a   : > { %p3109_p13 = pnand %p3107_p12, %p3104_p11 }
  0x3c   : > { %3112 = shalt.err (!%p3109_p13)
}
  0x3d   : > { %s3113_s23 = scalar_lea.vmem %s3521_s27, 8192  ;;  %p3121_p7 = scmp.lt.s32.totalorder %s3521_s27, %s3521_s27 }
  0x3e   : > { %p3114_p0 = scmp.ne.s32.totalorder %s3521_s27, %s3113_s23  ;;  %p3122_p9 = scmp.lt.s32.totalorder %s3113_s23, %s3113_s23 }
  0x40   : > { %p3116_p2 = pnand %p3114_p0, %p3533_p8  ;;  %p3123_p4 = por %p3122_p9, %p3121_p7 }
  0x42   : > { %p3117_p5 = pneg %p3116_p2 }
  0x44   : > { %p3124_p10 = pnand %p3123_p4, %p3117_p5 }
  0x46   : > { %3127 = shalt.err (!%p3124_p10)
}
  0x47   : > { %s3387_s8 = smov 256   ;;  %s3388_s4 = smov 16  }
  0x48   : > { %2715 = dma.hbm_to_vmem [thread:$0]  (!%p3517_p6), %s3910_s5, 8192, %s3521_s27, [#allocation9], %s3387_s8, %s3387_s8, %s3388_s4  }
  0x49   : > { %s3128_s22 = scalar_lea.hbm %s3914_s9, 2048 }
  0x4a   : > { %p3129_p11 = scmp.ne.s32.totalorder %s3914_s9, %s3128_s22  ;;  %p3135_p0 = scmp.lt.u32.totalorder %s3128_s22, %s3914_s9 }
  0x4c   : > { %p3131_p12 = pnand %p3129_p11, %p3533_p8 }
  0x4e   : > { %p3132_p13 = pneg %p3131_p12 }
  0x50   : > { %p3137_p2 = pnand %p3135_p0, %p3132_p13 }
  0x52   : > { %3140 = shalt.err (!%p3137_p2)
}
  0x53   : > { %s3141_s6 = scalar_lea.vmem %s463_s30, 2048  ;;  %p3149_p4 = scmp.lt.s32.totalorder %s463_s30, %s463_s30 }
  0x54   : > { %p3142_p5 = scmp.ne.s32.totalorder %s463_s30, %s3141_s6  ;;  %p3150_p10 = scmp.lt.s32.totalorder %s3141_s6, %s3141_s6 }
  0x56   : > { %p3144_p7 = pnand %p3142_p5, %p3533_p8  ;;  %p3151_p1 = por %p3150_p10, %p3149_p4 }
  0x58   : > { %p3145_p9 = pneg %p3144_p7 }
  0x5a   : > { %p3152_p3 = pnand %p3151_p1, %p3145_p9 }
  0x5c   : > { %3155 = shalt.err (!%p3152_p3)
}
  0x5d   : > { %s3941_s27 = smov 64   ;;  %s3389_s4 = smov [#allocation7]  }
  0x5e   : > { %2721 = dma.hbm_to_vmem [thread:$0]  (!%p3517_p6), %s3914_s9, 2048, %s463_s30, [#allocation12], %s3941_s27, %s3941_s27, %s3926_s12  }
  0x5f   : > { %s414_s10 = sshll.u32 %s3389_s4, 4  ;;  %s3156_s22 = scalar_lea.hbm %s3908_s3, 2048  ;;  %s415_s10 = int_to_ptr.vmem [resolvable:$true] %s414_s10 }
  0x60   : > { %p3157_p1 = scmp.ne.s32.totalorder %s3908_s3, %s3156_s22  ;;  %p3163_p12 = scmp.lt.u32.totalorder %s3156_s22, %s3908_s3 }
  0x62   : > { %p3159_p3 = pnand %p3157_p1, %p3533_p8 }
  0x64   : > { %p3160_p11 = pneg %p3159_p3 }
  0x66   : > { %p3165_p13 = pnand %p3163_p12, %p3160_p11 }
  0x68   : > { %3168 = shalt.err (!%p3165_p13)
}
  0x69   : > { %s3169_s30 = scalar_lea.vmem %s415_s10, 2048  ;;  %p3177_p7 = scmp.lt.s32.totalorder %s415_s10, %s415_s10 }
  0x6a   : > { %p3170_p0 = scmp.ne.s32.totalorder %s415_s10, %s3169_s30  ;;  %p3178_p9 = scmp.lt.s32.totalorder %s3169_s30, %s3169_s30 }
  0x6c   : > { %p3172_p2 = pnand %p3170_p0, %p3533_p8  ;;  %p3179_p4 = por %p3178_p9, %p3177_p7 }
  0x6e   : > { %p3173_p5 = pneg %p3172_p2 }
  0x70   : > { %p3180_p10 = pnand %p3179_p4, %p3173_p5 }
  0x72   : > { %3183 = shalt.err (!%p3180_p10)
}
  0x73   : > { %s3390_s15 = smov 128   ;;  %s3391_s8 = smov 8  }
  0x74   : > { %2712 = dma.hbm_to_vmem [thread:$0]  (!%p3517_p6), %s3908_s3, 2048, %s415_s10, [#allocation6], %s3390_s15, %s3390_s15, %s3391_s8  }
  0x75   : > { %s3392_s17 = smov [#allocation10]   ;;  %s3393_s29 = smov [#allocation13]  }
  0x76   : > { %s446_s22 = sshll.u32 %s3392_s17, 4  ;;  %s478_s14 = sshll.u32 %s3393_s29, 4  ;;  %s447_s22 = int_to_ptr.vmem [resolvable:$true] %s446_s22  ;;  %s3620_s14 = int_to_ptr.vmem [resolvable:$true] %s478_s14 }
  0x77   : > { %s3184_s30 = scalar_lea.hbm %s3912_s7, 8192 }
  0x78   : > { %p3185_p1 = scmp.ne.s32.totalorder %s3912_s7, %s3184_s30  ;;  %p3191_p12 = scmp.lt.u32.totalorder %s3184_s30, %s3912_s7 }
  0x7a   : > { %p3187_p3 = pnand %p3185_p1, %p3533_p8 }
  0x7c   : > { %p3188_p11 = pneg %p3187_p3 }
  0x7e   : > { %p3193_p13 = pnand %p3191_p12, %p3188_p11 }
  0x80   : > { %3196 = shalt.err (!%p3193_p13)
}
  0x81   : > { %s3197_s16 = scalar_lea.vmem %s447_s22, 8192  ;;  %p3205_p7 = scmp.lt.s32.totalorder %s447_s22, %s447_s22 }
  0x82   : > { %p3198_p0 = scmp.ne.s32.totalorder %s447_s22, %s3197_s16  ;;  %p3206_p9 = scmp.lt.s32.totalorder %s3197_s16, %s3197_s16 }
  0x84   : > { %p3200_p2 = pnand %p3198_p0, %p3533_p8  ;;  %p3207_p4 = por %p3206_p9, %p3205_p7 }
  0x86   : > { %p3201_p5 = pneg %p3200_p2 }
  0x88   : > { %p3208_p10 = pnand %p3207_p4, %p3201_p5 }
  0x8a   : > { %3211 = shalt.err (!%p3208_p10)
}
  0x8b   : > { %2718 = dma.hbm_to_vmem [thread:$0]  (!%p3517_p6), %s3912_s7, 8192, %s447_s22, [#allocation9], %s3390_s15, %s3390_s15, %s3391_s8  }
  0x8c   : > { %s3212_s23 = scalar_lea.hbm %s3916_s11, 1024 }
  0x8d   : > { %p3213_p1 = scmp.ne.s32.totalorder %s3916_s11, %s3212_s23  ;;  %p3219_p12 = scmp.lt.u32.totalorder %s3212_s23, %s3916_s11 }
  0x8f   : > { %p3215_p3 = pnand %p3213_p1, %p3533_p8 }
  0x91   : > { %p3216_p11 = pneg %p3215_p3 }
  0x93   : > { %p3221_p13 = pnand %p3219_p12, %p3216_p11 }
  0x95   : > { %3224 = shalt.err (!%p3221_p13)
}
  0x96   : > { %s3225_s15 = scalar_lea.vmem %s3620_s14, 1024  ;;  %p3233_p7 = scmp.lt.s32.totalorder %s3620_s14, %s3620_s14 }
  0x97   : > { %p3226_p0 = scmp.ne.s32.totalorder %s3620_s14, %s3225_s15  ;;  %p3234_p9 = scmp.lt.s32.totalorder %s3225_s15, %s3225_s15 }
  0x99   : > { %p3228_p2 = pnand %p3226_p0, %p3533_p8  ;;  %p3235_p4 = por %p3234_p9, %p3233_p7 }
  0x9b   : > { %p3229_p5 = pneg %p3228_p2 }
  0x9d   : > { %p3236_p10 = pnand %p3235_p4, %p3229_p5 }
  0x9f   : > { %3239 = shalt.err (!%p3236_p10)
}
  0xa0   : > { %s3942_s8 = smov 4   ;;  %s3394_s1 = smov [#allocation14]  }
  0xa1   : > { %2724 = dma.hbm_to_vmem [thread:$0]  (!%p3517_p6), %s3916_s11, 1024, %s3620_s14, [#allocation12], %s3941_s27, %s3941_s27, %s3942_s8  }
  0xa2   : > { %s494_s12 = sshll.u32 %s3394_s1, 4  ;;  %s3240_s23 = scalar_lea.hbm %s3918_s13, 1024  ;;  %s495_s12 = int_to_ptr.vmem [resolvable:$true] %s494_s12 }
  0xa3   : > { %p3241_p1 = scmp.ne.s32.totalorder %s3918_s13, %s3240_s23  ;;  %p3247_p12 = scmp.lt.u32.totalorder %s3240_s23, %s3918_s13 }
  0xa5   : > { %p3243_p3 = pnand %p3241_p1, %p3533_p8 }
  0xa7   : > { %p3244_p11 = pneg %p3243_p3 }
  0xa9   : > { %p3249_p13 = pnand %p3247_p12, %p3244_p11 }
  0xab   : > { %3252 = shalt.err (!%p3249_p13)
}
  0xac   : > { %s3253_s14 = scalar_lea.vmem %s495_s12, 1024  ;;  %p3261_p7 = scmp.lt.s32.totalorder %s495_s12, %s495_s12 }
  0xad   : > { %p3254_p0 = scmp.ne.s32.totalorder %s495_s12, %s3253_s14  ;;  %p3262_p9 = scmp.lt.s32.totalorder %s3253_s14, %s3253_s14 }
  0xaf   : > { %p3256_p2 = pnand %p3254_p0, %p3533_p8  ;;  %p3263_p4 = por %p3262_p9, %p3261_p7 }
  0xb1   : > { %p3257_p5 = pneg %p3256_p2 }
  0xb3   : > { %p3264_p10 = pnand %p3263_p4, %p3257_p5 }
  0xb5   : > { %3267 = shalt.err (!%p3264_p10)
}
  0xb6   : > { %2727 = dma.hbm_to_vmem [thread:$0]  (!%p3517_p6), %s3918_s13, 1024, %s495_s12, [#allocation15], %s3941_s27, %s3941_s27, %s3942_s8  }
  0xb7   : > { %s2368_s28 = sadd.s32 4294967294, %s3380_s21   ;;  %s3689_s26 = sadd.s32 1, %s3380_s21  }
  0xb8   : > { %s42_s16 = sadd.s32 1, %s3376_s20  ;;  %s39_s1 = ssub.s32 %s3380_s21, %s3689_s26 }
  0xb9   : > { %p49_p8 = scmp.ne.s32.totalorder %s3376_s20, %s3372_s19  ;;  %p40_p1 = scmp.eq.s32.totalorder %s39_s1, 0 }
  0xba   : > { %p50_p3 = scmp.eq.s32.totalorder %s3380_s21, 0  ;;  %p55_p11 = scmp.ne.s32.totalorder %s3372_s19, %s3368_s18 }
  0xbb   : > { %p373_p12 = scmp.eq.s32.totalorder %s3501_s24, 1  ;;  %p3943_p0 = scmp.eq.s32.totalorder %s3501_s24, 0 }
  0xbc   : > { %s3701_s17 = scalar_select %p40_p1, %s3376_s20, %s42_s16  }
  0xbd   : > { %p51_p13 = por %p50_p3, %p49_p8  ;;  %p3705_p2 = por %p3943_p0, %p55_p11 }
  0xbe   : > { %p3709_p6 = por %p373_p12, %p49_p8  ;;  %p379_p5 = scmp.eq.s32.totalorder %s2368_s28, 1 }
  0xbf   : > { %p2743_p7 = scmp.lt.s32.totalorder %s3380_s21, 2  ;;  %s511_s8 = sand.u32 1, %s3376_s20  }
  0xc0   : > { %s3945_s27 = scalar_select %p3709_p6, 1, 0 }
  0xc1   : > { %p3715_p9 = por %p379_p5, %p55_p11  ;;  %s2378_s23 = sshll.u32 %s511_s8, 3 }
  0xc2   : > { %s2379_s6 = sshll.u32 %s3380_s21, 7  ;;  %s515_s14 = scalar_lea.vmem [#allocation2], %s2378_s23 }
  0xc3   : > { %s3946_s12 = scalar_select %p3715_p9, 1, 0 }
  0xc4   : > { %s3723_s10 = scalar_lea.hbm %s3905_s0, %s2379_s6  ;;  %s522_s15 = sshll.u32 %s515_s14, 4  ;;  %s3729_s15 = int_to_ptr.vmem [resolvable:$true] %s522_s15 }
  0xc5   : > { %p3725_p4 = pnand %p2743_p7, %p51_p13  ;;  %s512_s28 = scalar_lea.sflag [#allocation3], %s511_s8 }
  0xc6   : > { %s3268_s16 = scalar_lea.hbm %s3723_s10, 128  ;;  %s3273_s6 = scalar_lea.hbm %s3905_s0, 256 }
  0xc7   : > { %p3269_p10 = scmp.ne.s32.totalorder %s3723_s10, %s3268_s16  ;;  %p3270_p8 = pneg %p3725_p4 }
  0xc8   : > { %p3274_p11 = scmp.lt.u32.totalorder %s3723_s10, %s3905_s0  ;;  %p3275_p12 = scmp.lt.u32.totalorder %s3273_s6, %s3268_s16 }
  0xc9   : > { %p3271_p1 = pnand %p3270_p8, %p3269_p10  ;;  %p3277_p0 = scmp.lt.u32.totalorder %s3268_s16, %s3723_s10 }
  0xca   : > { %p3276_p13 = por %p3275_p12, %p3274_p11 }
  0xcb   : > { %p3272_p3 = pneg %p3271_p1 }
  0xcc   : > { %p3278_p5 = por %p3277_p0, %p3276_p13 }
  0xce   : > { %p3279_p7 = pnand %p3278_p5, %p3272_p3 }
  0xd0   : > { %3282 = shalt.err (!%p3279_p7)
}
  0xd1   : > { %s3283_s8 = scalar_lea.vmem %s3729_s15, 128  ;;  %s3395_s14 = smov [#allocation2]  }
  0xd2   : > { %p3284_p10 = scmp.ne.s32.totalorder %s3729_s15, %s3283_s8  ;;  %s3288_s1 = sshll.u32 %s3395_s14, 4  ;;  %s3289_s1 = int_to_ptr.vmem [resolvable:$false] %s3288_s1 }
  0xd3   : > { %s3290_s23 = scalar_lea.vmem %s3289_s1, 256  ;;  %p3291_p6 = scmp.lt.s32.totalorder %s3729_s15, %s3289_s1 }
  0xd4   : > { %p3286_p1 = pnand %p3284_p10, %p3270_p8  ;;  %p3292_p11 = scmp.lt.s32.totalorder %s3290_s23, %s3283_s8 }
  0xd6   : > { %p3287_p9 = pneg %p3286_p1  ;;  %p3293_p12 = por %p3292_p11, %p3291_p6 }
  0xd8   : > { %p3294_p13 = pnand %p3293_p12, %p3287_p9 }
  0xda   : > { %3297 = shalt.err (!%p3294_p13)
}
  0xdb   : > { %2731 = dma.hbm_to_vmem [thread:$0]  (!%p3725_p4), %s3723_s10, 128, %s3729_s15, %s512_s28  }
  0xdc   : > { %p3948_p3 = scmp.ne.s32.totalorder %s3937_s25, 0 }
  0xdd   : > { %s3759_s16 = sand.u32 (!%p3948_p3), 1, %s3372_s19  }
  0xde   : > { %531 = sbr.rel (%p3948_p3) target bundleno = 1914 (0x77a), region = 80  ;;  %s2381_s6 = sshll.u32 (!%p3948_p3), %s3759_s16, 3 }
  0xdf   : > { %s534_s30 = scalar_lea.sflag (!%p3948_p3), [#allocation3], %s3759_s16  ;;  %s537_s4 = scalar_lea.vmem (!%p3948_p3), [#allocation2], %s2381_s6 }
  0xe5   : > { %3343 = dma.done.wait (%p3705_p2), %s534_s30, 128  }
  0xe6   : > { %3345 = vsyncadd (%p3705_p2), %s534_s30, 4294967168  ;;  %p3949_p6 = scmp.eq.s32.totalorder %s3501_s24, 0 }
  0xe8   : > { %3347 = dma.done.wait (%p3949_p6), [#allocation6], 2304   ;;  %p3950_p9 = pmov %p3949_p6 }
  0xe9   : > { %p3951_p4 = pmov %p3949_p6 }
  0xea   : > { %3349 = vsyncadd (%p3950_p9), [#allocation6], 4294964992 }
  0xeb   : > { %3351 = dma.done.wait (%p3951_p4), [#allocation9], 16384   ;;  %p3952_p8 = pmov %p3951_p4 }
  0xec   : > { %p3953_p0 = pmov %p3951_p4 }
  0xed   : > { %3353 = vsyncadd (%p3952_p8), [#allocation9], 4294950912 }
  0xee   : > { %3355 = dma.done.wait (%p3953_p0), [#allocation12], 3072   ;;  %p3954_p5 = pmov %p3953_p0 }
  0xef   : > { %p3955_p2 = pmov %p3953_p0 }
  0xf0   : > { %3357 = vsyncadd (%p3954_p5), [#allocation12], 4294964224 }
  0xf1   : > { %3359 = dma.done.wait (%p3955_p2), [#allocation15], 1024   ;;  %p3956_p7 = pmov %p3953_p0 }
  0xf2   : > { %v3396_v0 = vmov 0.0   ;;  %vm3397_vm0 = vmmov 0   ;;  %v2800_v1 = vld [vmem:[#allocation5] sm:$0xff]   ;;  %v2801_v2 = vld [vmem:[#allocation5 + $0x8] sm:$0xff]   ;;  %v613_v3 = vld [vmem:[%s537_s4] sm:$0xff]  ;;  %vm638_vm1 = vcmask 261120  }
  0xf3   : > { %3361 = vsyncadd (%p3956_p7), [#allocation15], 4294966272  ;;  %2620 = vmatprep.subr.bf16.mxu0 %v3396_v0  ;;  %2624 = vmatprep.mubr.msk.bf16.mxu0 %vm3397_vm0, %v3396_v0  ;;  %v2802_v4 = vld [vmem:[#allocation7 + $0x4] ss:$8 sps:$4 sm:$0xff]   ;;  %v2804_v5 = vld [vmem:[#allocation7] ss:$8 sps:$4 sm:$0xff]   ;;  %v614_v7 = vpack.c.bf16 %v613_v3, %v613_v3 }
  0xf4   : > { %2621 = vmatpush3.bf16.msra.mxu0 %v2800_v1  ;;  %v2805_v6 = vld [vmem:[#allocation7 + $0x14] ss:$8 sps:$4 sm:$0xff]   ;;  %792 = vmatprep.subr.bf16.mxu1 %v2802_v4  ;;  %v2807_v8 = vld [vmem:[#allocation7 + $0x10] ss:$8 sps:$4 sm:$0xff]   ;;  %v2808_v9 = vld [vmem:[#allocation7 + $0x24] ss:$8 sps:$4 sm:$0xff]  }
  0xf5   : > { %2622 = vmatprep.subr.bf16.mxu0 %v3396_v0  ;;  %793 = vmatpush1.bf16.msra.mxu1 %v2804_v5  ;;  %v2810_v10 = vld [vmem:[#allocation7 + $0x20] ss:$8 sps:$4 sm:$0xff]   ;;  %v2811_v11 = vld [vmem:[#allocation7 + $0x34] ss:$8 sps:$4 sm:$0xff]   ;;  %v2813_v12 = vld [vmem:[#allocation7 + $0x30] ss:$8 sps:$4 sm:$0xff]  }
  0xf6   : > { %794 = vmatprep.subr.bf16.mxu1 %v2805_v6  ;;  %v2814_v13 = vld [vmem:[#allocation7 + $0x44] ss:$8 sps:$4 sm:$0xff]   ;;  %v2816_v14 = vld [vmem:[#allocation7 + $0x40] ss:$8 sps:$4 sm:$0xff]   ;;  %v2817_v15 = vld [vmem:[#allocation7 + $0x54] ss:$8 sps:$4 sm:$0xff]  }
  0xf7   : > { %v2819_v16 = vld [vmem:[#allocation7 + $0x50] ss:$8 sps:$4 sm:$0xff]   ;;  %v2820_v17 = vld [vmem:[#allocation7 + $0x64] ss:$8 sps:$4 sm:$0xff]   ;;  %v2822_v18 = vld [vmem:[#allocation7 + $0x60] ss:$8 sps:$4 sm:$0xff]  }
  0xf8   : > { %2623 = vmatpush3.bf16.msra.mxu0 %v2801_v2  ;;  %v2823_v19 = vld [vmem:[#allocation7 + $0x74] ss:$8 sps:$4 sm:$0xff]   ;;  %v2825_v20 = vld [vmem:[#allocation7 + $0x70] ss:$8 sps:$4 sm:$0xff]   ;;  %v3398_v21 = vmov 0   ;;  %s3957_s22 = sld [smem:[#allocation24_spill]] }
  0xf9   : > { %795 = vmatpush1.bf16.msra.mxu1 %v2807_v8  ;;  %824 = vmatprep.mubr.bf16.mxu1 %v3398_v21  ;;  %v2826_v22 = vld [vmem:[#allocation8] ss:$16 sps:$4 sm:$0xff]   ;;  %v2828_v23 = vld [vmem:[#allocation8 + $0x4] ss:$16 sps:$4 sm:$0xff]   ;;  %v2831_v24 = vld [vmem:[#allocation8 + $0xc] ss:$16 sps:$4 sm:$0xff]  }
  0xfa   : > { %796 = vmatprep.subr.bf16.mxu1 %v2808_v9  ;;  %v2834_v25 = vld [vmem:[#allocation8 + $0x24] ss:$16 sps:$4 sm:$0xff]   ;;  %1243 = vmatprep.subr.bf16.mxu0 %v2828_v23  ;;  %v2832_v26 = vld [vmem:[#allocation8 + $0x20] ss:$16 sps:$4 sm:$0xff]   ;;  %v2829_v54 = vld [vmem:[#allocation8 + $0x8] ss:$16 sps:$4 sm:$0xff]  }
  0xfb   : > { %2625 = vmatmul.mubr.msk.bf16.vlgmr.msra.gmra.mrb[0].mxu0 %vm638_vm1, %v614_v7  ;;  %v2840_v27 = vld [vmem:[#allocation8 + $0x44] ss:$16 sps:$4 sm:$0xff]   ;;  %v2838_v28 = vld [vmem:[#allocation8 + $0x40] ss:$16 sps:$4 sm:$0xff]   ;;  %v2837_v56 = vld [vmem:[#allocation8 + $0x2c] ss:$16 sps:$4 sm:$0xff]  }
  0xfc   : > { %1244 = vmatpush1.bf16.msra.mxu0 %v2826_v22  ;;  %v2846_v29 = vld [vmem:[#allocation8 + $0x64] ss:$16 sps:$4 sm:$0xff]   ;;  %v2844_v30 = vld [vmem:[#allocation8 + $0x60] ss:$16 sps:$4 sm:$0xff]   ;;  %v2835_v57 = vld [vmem:[#allocation8 + $0x28] ss:$16 sps:$4 sm:$0xff]  }
  0xfd   : > { %797 = vmatpush1.bf16.msra.mxu1 %v2810_v10  ;;  %1245 = vmatprep.subr.bf16.mxu0 %v2834_v25  ;;  %v2852_v31 = vld [vmem:[#allocation8 + $0x84] ss:$16 sps:$4 sm:$0xff]   ;;  %v2850_v32 = vld [vmem:[#allocation8 + $0x80] ss:$16 sps:$4 sm:$0xff]   ;;  %v2843_v58 = vld [vmem:[#allocation8 + $0x4c] ss:$16 sps:$4 sm:$0xff]  }
  0xfe   : > { %798 = vmatprep.subr.bf16.mxu1 %v2811_v11  ;;  %v2858_v33 = vld [vmem:[#allocation8 + $0xa4] ss:$16 sps:$4 sm:$0xff]   ;;  %v2856_v34 = vld [vmem:[#allocation8 + $0xa0] ss:$16 sps:$4 sm:$0xff]   ;;  %v2841_v59 = vld [vmem:[#allocation8 + $0x48] ss:$16 sps:$4 sm:$0xff]  }
  0xff   : > { %v2864_v35 = vld [vmem:[#allocation8 + $0xc4] ss:$16 sps:$4 sm:$0xff]   ;;  %v2862_v36 = vld [vmem:[#allocation8 + $0xc0] ss:$16 sps:$4 sm:$0xff]   ;;  %v2849_v60 = vld [vmem:[#allocation8 + $0x6c] ss:$16 sps:$4 sm:$0xff]  }
 0x100   : > { %1246 = vmatpush1.bf16.msra.mxu0 %v2832_v26  ;;  %v2870_v37 = vld [vmem:[#allocation8 + $0xe4] ss:$16 sps:$4 sm:$0xff]   ;;  %v2868_v38 = vld [vmem:[#allocation8 + $0xe0] ss:$16 sps:$4 sm:$0xff]   ;;  %v2847_v61 = vld [vmem:[#allocation8 + $0x68] ss:$16 sps:$4 sm:$0xff]  }
 0x101   : > { %799 = vmatpush1.bf16.msra.mxu1 %v2813_v12  ;;  %1247 = vmatprep.subr.bf16.mxu0 %v2840_v27  ;;  %v2876_v39 = vld [vmem:[#allocation8 + $0x104] ss:$16 sps:$4 sm:$0xff]   ;;  %v2874_v40 = vld [vmem:[#allocation8 + $0x100] ss:$16 sps:$4 sm:$0xff]   ;;  %v2855_v62 = vld [vmem:[#allocation8 + $0x8c] ss:$16 sps:$4 sm:$0xff]  }
 0x102   : > { %800 = vmatprep.subr.bf16.mxu1 %v2814_v13  ;;  %v2882_v41 = vld [vmem:[#allocation8 + $0x124] ss:$16 sps:$4 sm:$0xff]   ;;  %v2880_v42 = vld [vmem:[#allocation8 + $0x120] ss:$16 sps:$4 sm:$0xff]   ;;  %v2853_v63 = vld [vmem:[#allocation8 + $0x88] ss:$16 sps:$4 sm:$0xff]  }
 0x103   : > { %v2888_v43 = vld [vmem:[#allocation8 + $0x144] ss:$16 sps:$4 sm:$0xff]   ;;  %v2886_v44 = vld [vmem:[#allocation8 + $0x140] ss:$16 sps:$4 sm:$0xff]   ;;  %v2861_v1 = vld [vmem:[#allocation8 + $0xac] ss:$16 sps:$4 sm:$0xff]  }
 0x104   : > { %1248 = vmatpush1.bf16.msra.mxu0 %v2838_v28  ;;  %v2894_v45 = vld [vmem:[#allocation8 + $0x164] ss:$16 sps:$4 sm:$0xff]   ;;  %v2892_v46 = vld [vmem:[#allocation8 + $0x160] ss:$16 sps:$4 sm:$0xff]   ;;  %v2859_v2 = vld [vmem:[#allocation8 + $0xa8] ss:$16 sps:$4 sm:$0xff]  }
 0x105   : > { %801 = vmatpush1.bf16.msra.mxu1 %v2816_v14  ;;  %1249 = vmatprep.subr.bf16.mxu0 %v2846_v29  ;;  %v2390_v47 = vld [vmem:[%s3907_s2] ss:$0 sm:$0xff]  ;;  %v2867_v3 = vld [vmem:[#allocation8 + $0xcc] ss:$16 sps:$4 sm:$0xff]   ;;  %v2865_v4 = vld [vmem:[#allocation8 + $0xc8] ss:$16 sps:$4 sm:$0xff]  }
 0x106   : > { %802 = vmatprep.subr.bf16.mxu1 %v2817_v15  ;;  %v2873_v5 = vld [vmem:[#allocation8 + $0xec] ss:$16 sps:$4 sm:$0xff]   ;;  %v2871_v6 = vld [vmem:[#allocation8 + $0xe8] ss:$16 sps:$4 sm:$0xff]   ;;  %v2900_v15 = vld [vmem:[#allocation8 + $0x184] ss:$16 sps:$4 sm:$0xff]  }
 0x107   : > { %v2879_v7 = vld [vmem:[#allocation8 + $0x10c] ss:$16 sps:$4 sm:$0xff]   ;;  %v2877_v8 = vld [vmem:[#allocation8 + $0x108] ss:$16 sps:$4 sm:$0xff]   ;;  %v2904_v21 = vld [vmem:[#allocation8 + $0x1a0] ss:$16 sps:$4 sm:$0xff]  }
 0x108   : > { %1250 = vmatpush1.bf16.msra.mxu0 %v2844_v30  ;;  %v2885_v9 = vld [vmem:[#allocation8 + $0x12c] ss:$16 sps:$4 sm:$0xff]   ;;  %v2883_v10 = vld [vmem:[#allocation8 + $0x128] ss:$16 sps:$4 sm:$0xff]   ;;  %v2912_v23 = vld [vmem:[#allocation8 + $0x1c4] ss:$16 sps:$4 sm:$0xff]  }
 0x109   : > { %803 = vmatpush1.bf16.msra.mxu1 %v2819_v16  ;;  %1251 = vmatprep.subr.bf16.mxu0 %v2852_v31  ;;  %v2891_v11 = vld [vmem:[#allocation8 + $0x14c] ss:$16 sps:$4 sm:$0xff]   ;;  %v2889_v12 = vld [vmem:[#allocation8 + $0x148] ss:$16 sps:$4 sm:$0xff]   ;;  %v2910_v25 = vld [vmem:[#allocation8 + $0x1c0] ss:$16 sps:$4 sm:$0xff]  }
 0x10a   : > { %804 = vmatprep.subr.bf16.mxu1 %v2820_v17  ;;  %v2897_v13 = vld [vmem:[#allocation8 + $0x16c] ss:$16 sps:$4 sm:$0xff]   ;;  %v2895_v14 = vld [vmem:[#allocation8 + $0x168] ss:$16 sps:$4 sm:$0xff]   ;;  %v2898_v17 = vld [vmem:[#allocation8 + $0x180] ss:$16 sps:$4 sm:$0xff]  }
 0x10b   : > { %v2903_v16 = vld [vmem:[#allocation8 + $0x18c] ss:$16 sps:$4 sm:$0xff]   ;;  %v2907_v22 = vld [vmem:[#allocation8 + $0x1a8] ss:$16 sps:$4 sm:$0xff]   ;;  %v2918_v27 = vld [vmem:[#allocation8 + $0x1e4] ss:$16 sps:$4 sm:$0xff]  }
 0x10c   : > { %1252 = vmatpush1.bf16.msra.mxu0 %v2850_v32  ;;  %v2913_v26 = vld [vmem:[#allocation8 + $0x1c8] ss:$16 sps:$4 sm:$0xff]   ;;  %v2921_v28 = vld [vmem:[#allocation8 + $0x1ec] ss:$16 sps:$4 sm:$0xff]   ;;  %v2916_v29 = vld [vmem:[#allocation8 + $0x1e0] ss:$16 sps:$4 sm:$0xff]   ;;  %v702_v32 = vlaneseq }
 0x10d   : > { %805 = vmatpush1.bf16.msra.mxu1 %v2822_v18  ;;  %1253 = vmatprep.subr.bf16.mxu0 %v2858_v33  ;;  %v2901_v18 = vld [vmem:[#allocation8 + $0x188] ss:$16 sps:$4 sm:$0xff]   ;;  %v2924_v31 = vld [vmem:[#allocation10 + $0x4] ss:$8 sps:$4 sm:$0xff]   ;;  %s3958_s14 = sld [smem:[#allocation25_spill]]  ;;  %s3959_s30 = sld [smem:[#allocation26_spill]] }
 0x10e   : > { %806 = vmatprep.subr.bf16.mxu1 %v2823_v19  ;;  %v2906_v19 = vld [vmem:[#allocation8 + $0x1a4] ss:$16 sps:$4 sm:$0xff]   ;;  %v2919_v30 = vld [vmem:[#allocation8 + $0x1e8] ss:$16 sps:$4 sm:$0xff]   ;;  %v3792_v33 = vshrl.u32 %v702_v32, 7  ;;  %s3960_s29 = sld [smem:[#allocation27_spill]] }
 0x10f   : > { %s2574_s1 = sshll.u32 %s3501_s24, 7  ;;  %s611_s23 = scalar_lea.vmem [#allocation16], %s2381_s6 }
 0x110   : > { %1254 = vmatpush1.bf16.msra.mxu0 %v2856_v34  ;;  %v3795_v34 = vsub.s32 0, %v3792_v33  ;;  %s2218_s24 = scalar_lea.sflag [#allocation4], %s3759_s16  ;;  %p3964_p1 = scmp.ne.s32.totalorder %s3945_s27, 0 }
 0x111   : > { %807 = vmatpush1.bf16.msra.mxu1 %v2825_v20  ;;  %1255 = vmatprep.subr.bf16.mxu0 %v2864_v35  ;;  %v2909_v20 = vld [vmem:[#allocation8 + $0x1ac] ss:$16 sps:$4 sm:$0xff]   ;;  %v700_v35 = vld [vmem:[%s3957_s22] sm:$0x3]  ;;  %s3961_s22 = sld [smem:[#allocation28_spill]]  ;;  %s3399_s6 = smov [#allocation16]  }
 0x112   : > { %1284 = vmatprep.subr.bf16.mxu1 %v2831_v24  ;;  %v2915_v24 = vld [vmem:[#allocation8 + $0x1cc] ss:$16 sps:$4 sm:$0xff]  }
 0x114   : > { %1256 = vmatpush1.bf16.msra.mxu0 %v2862_v36  ;;  %v3801_v36 = vsub.s32 1, %v3792_v33 }
 0x115   : > { %1257 = vmatprep.subr.bf16.mxu0 %v2870_v37  ;;  %v705_v37 = vrot.slane %v700_v35, %v3795_v34 }
 0x118   : > { %1258 = vmatpush1.bf16.msra.mxu0 %v2868_v38  ;;  %v709_v38 = vrot.slane %v700_v35, %v3801_v36 }
 0x119   : > { %1259 = vmatprep.subr.bf16.mxu0 %v2876_v39 }
 0x11c   : > { %1260 = vmatpush1.bf16.msra.mxu0 %v2874_v40 }
 0x11d   : > { %1261 = vmatprep.subr.bf16.mxu0 %v2882_v41 }
 0x120   : > { %1262 = vmatpush1.bf16.msra.mxu0 %v2880_v42 }
 0x121   : > { %1263 = vmatprep.subr.bf16.mxu0 %v2888_v43 }
 0x124   : > { %1264 = vmatpush1.bf16.msra.mxu0 %v2886_v44 }
 0x125   : > { %1265 = vmatprep.subr.bf16.mxu0 %v2894_v45 }
 0x128   : > { %1266 = vmatpush1.bf16.msra.mxu0 %v2892_v46 }
 0x129   : > { %1267 = vmatprep.subr.bf16.mxu0 %v2900_v15  ;;  %v2969_v15 = vld [vmem:[#allocation10 + $0xf4] ss:$8 sps:$4 sm:$0xff]  }
 0x12c   : > { %1268 = vmatpush1.bf16.msra.mxu0 %v2898_v17  ;;  %v2972_v17 = vld [vmem:[#allocation10 + $0x104] ss:$8 sps:$4 sm:$0xff]  }
 0x12d   : > { %1269 = vmatprep.subr.bf16.mxu0 %v2906_v19  ;;  %v3019_v19 = vld [vmem:[#allocation11] sm:$0xff]  }
 0x130   : > { %1270 = vmatpush1.bf16.msra.mxu0 %v2904_v21  ;;  %v3021_v21 = vld [vmem:[#allocation11 + $0x8] sm:$0xff]  }
 0x131   : > { %1271 = vmatprep.subr.bf16.mxu0 %v2912_v23  ;;  %v3023_v23 = vld [vmem:[#allocation11 + $0x10] sm:$0xff]  }
 0x134   : > { %1272 = vmatpush1.bf16.msra.mxu0 %v2910_v25  ;;  %v3025_v25 = vld [vmem:[#allocation11 + $0x18] sm:$0xff]  }
 0x135   : > { %1273 = vmatprep.subr.bf16.mxu0 %v2918_v27  ;;  %v917_v27 = vsub.s32 3, %v3792_v33 }
 0x138   : > { %1274 = vmatpush1.bf16.msra.mxu0 %v2916_v29 }
 0x139   : > { %1729 = vmatprep.subr.bf16.mxu0 %v2924_v31 }
 0x1ce   : > { %v676_v48 = vpop.f32.mrb[0].mxu0 }
 0x1cf   : > { %v677_v49 = vadd.f32 %v2390_v47, %v676_v48  ;;  %v2626_v50 = vpop.f32.mrb[1].mxu0  ;;  %v2922_v48 = vld [vmem:[#allocation10] ss:$8 sps:$4 sm:$0xff]  }
 0x1d0   : > { %v679_v51 = vpop.f32.mrb[2].mxu0  ;;  %v2927_v50 = vld [vmem:[#allocation10 + $0x14] ss:$8 sps:$4 sm:$0xff]  }
 0x1d1   : > { %3050 = vtanh.f32 %v677_v49  ;;  %v2627_v52 = vpop.f32.mrb[3].mxu0  ;;  %v2925_v51 = vld [vmem:[#allocation10 + $0x10] ss:$8 sps:$4 sm:$0xff]  }
 0x1d2   : > { %v2930_v52 = vld [vmem:[#allocation10 + $0x24] ss:$8 sps:$4 sm:$0xff]  }
 0x1db   : > { %v3051_v53 = vpop.eup %3050 }
 0x1dc   : > { %v683_v55 = vpack.c.bf16 %v3051_v53, %v3051_v53  ;;  %v2928_v53 = vld [vmem:[#allocation10 + $0x20] ss:$8 sps:$4 sm:$0xff]  }
 0x1de   : > { %825 = vmatmul.mubr.bf16.vlgmr.msra.gmra.mrb[0].mxu1 %v683_v55  ;;  %v2931_v55 = vld [vmem:[#allocation10 + $0x30] ss:$8 sps:$4 sm:$0xff]  }
 0x1df   : > { %1285 = vmatpush1.bf16.msra.mxu1 %v2829_v54  ;;  %v2933_v54 = vld [vmem:[#allocation10 + $0x34] ss:$8 sps:$4 sm:$0xff]  }
 0x1e0   : > { %1286 = vmatprep.subr.bf16.mxu1 %v2837_v56  ;;  %v2936_v56 = vld [vmem:[#allocation10 + $0x44] ss:$8 sps:$4 sm:$0xff]  }
 0x1e3   : > { %1287 = vmatpush1.bf16.msra.mxu1 %v2835_v57  ;;  %v2934_v57 = vld [vmem:[#allocation10 + $0x40] ss:$8 sps:$4 sm:$0xff]  }
 0x1e4   : > { %1288 = vmatprep.subr.bf16.mxu1 %v2843_v58  ;;  %v2939_v58 = vld [vmem:[#allocation10 + $0x54] ss:$8 sps:$4 sm:$0xff]  }
 0x1e7   : > { %1289 = vmatpush1.bf16.msra.mxu1 %v2841_v59  ;;  %v2937_v59 = vld [vmem:[#allocation10 + $0x50] ss:$8 sps:$4 sm:$0xff]  }
 0x1e8   : > { %1290 = vmatprep.subr.bf16.mxu1 %v2849_v60  ;;  %v2942_v60 = vld [vmem:[#allocation10 + $0x64] ss:$8 sps:$4 sm:$0xff]  }
 0x1eb   : > { %1291 = vmatpush1.bf16.msra.mxu1 %v2847_v61  ;;  %v2940_v61 = vld [vmem:[#allocation10 + $0x60] ss:$8 sps:$4 sm:$0xff]  }
 0x1ec   : > { %1292 = vmatprep.subr.bf16.mxu1 %v2855_v62  ;;  %v2945_v62 = vld [vmem:[#allocation10 + $0x74] ss:$8 sps:$4 sm:$0xff]  }
 0x1ef   : > { %1293 = vmatpush1.bf16.msra.mxu1 %v2853_v63  ;;  %v2943_v63 = vld [vmem:[#allocation10 + $0x70] ss:$8 sps:$4 sm:$0xff]  }
 0x1f0   : > { %1294 = vmatprep.subr.bf16.mxu1 %v2861_v1  ;;  %v2948_v1 = vld [vmem:[#allocation10 + $0x84] ss:$8 sps:$4 sm:$0xff]  }
 0x1f3   : > { %1295 = vmatpush1.bf16.msra.mxu1 %v2859_v2  ;;  %v2946_v2 = vld [vmem:[#allocation10 + $0x80] ss:$8 sps:$4 sm:$0xff]  }
 0x1f4   : > { %1296 = vmatprep.subr.bf16.mxu1 %v2867_v3  ;;  %v2951_v3 = vld [vmem:[#allocation10 + $0x94] ss:$8 sps:$4 sm:$0xff]  }
 0x1f7   : > { %1297 = vmatpush1.bf16.msra.mxu1 %v2865_v4  ;;  %v2949_v4 = vld [vmem:[#allocation10 + $0x90] ss:$8 sps:$4 sm:$0xff]  }
 0x1f8   : > { %1298 = vmatprep.subr.bf16.mxu1 %v2873_v5  ;;  %v2954_v5 = vld [vmem:[#allocation10 + $0xa4] ss:$8 sps:$4 sm:$0xff]  }
 0x1fb   : > { %1299 = vmatpush1.bf16.msra.mxu1 %v2871_v6  ;;  %v2952_v6 = vld [vmem:[#allocation10 + $0xa0] ss:$8 sps:$4 sm:$0xff]  }
 0x1fc   : > { %1300 = vmatprep.subr.bf16.mxu1 %v2879_v7  ;;  %v2957_v7 = vld [vmem:[#allocation10 + $0xb4] ss:$8 sps:$4 sm:$0xff]  }
 0x1ff   : > { %1301 = vmatpush1.bf16.msra.mxu1 %v2877_v8  ;;  %v2955_v8 = vld [vmem:[#allocation10 + $0xb0] ss:$8 sps:$4 sm:$0xff]  }
 0x200   : > { %1302 = vmatprep.subr.bf16.mxu1 %v2885_v9  ;;  %v2960_v9 = vld [vmem:[#allocation10 + $0xc4] ss:$8 sps:$4 sm:$0xff]  }
 0x203   : > { %1303 = vmatpush1.bf16.msra.mxu1 %v2883_v10  ;;  %v2958_v10 = vld [vmem:[#allocation10 + $0xc0] ss:$8 sps:$4 sm:$0xff]  }
 0x204   : > { %1304 = vmatprep.subr.bf16.mxu1 %v2891_v11  ;;  %v2963_v11 = vld [vmem:[#allocation10 + $0xd4] ss:$8 sps:$4 sm:$0xff]  }
 0x207   : > { %1305 = vmatpush1.bf16.msra.mxu1 %v2889_v12  ;;  %v2961_v12 = vld [vmem:[#allocation10 + $0xd0] ss:$8 sps:$4 sm:$0xff]  }
 0x208   : > { %1306 = vmatprep.subr.bf16.mxu1 %v2897_v13  ;;  %v2966_v13 = vld [vmem:[#allocation10 + $0xe4] ss:$8 sps:$4 sm:$0xff]  }
 0x20b   : > { %1307 = vmatpush1.bf16.msra.mxu1 %v2895_v14  ;;  %v2964_v14 = vld [vmem:[#allocation10 + $0xe0] ss:$8 sps:$4 sm:$0xff]  }
 0x20c   : > { %1308 = vmatprep.subr.bf16.mxu1 %v2903_v16  ;;  %v2967_v16 = vld [vmem:[#allocation10 + $0xf0] ss:$8 sps:$4 sm:$0xff]  }
 0x20f   : > { %1309 = vmatpush1.bf16.msra.mxu1 %v2901_v18  ;;  %v3018_v18 = vld [vmem:[#allocation11 + $0x40] sm:$0xff]  }
 0x210   : > { %1310 = vmatprep.subr.bf16.mxu1 %v2909_v20  ;;  %v3020_v20 = vld [vmem:[#allocation11 + $0x48] sm:$0xff]  }
 0x213   : > { %1311 = vmatpush1.bf16.msra.mxu1 %v2907_v22  ;;  %v3022_v22 = vld [vmem:[#allocation11 + $0x50] sm:$0xff]  }
 0x214   : > { %1312 = vmatprep.subr.bf16.mxu1 %v2915_v24  ;;  %v3024_v24 = vld [vmem:[#allocation11 + $0x58] sm:$0xff]  }
 0x217   : > { %1313 = vmatpush1.bf16.msra.mxu1 %v2913_v26  ;;  %v3808_v26 = vld [vmem:[%s3958_s14] sm:$0xf]  ;;  %s3962_s14 = sld [smem:[#allocation29_spill]] }
 0x218   : > { %1314 = vmatprep.subr.bf16.mxu1 %v2921_v28  ;;  %v906_v28 = vrot.slane %v3808_v26, %v3795_v34  ;;  %v910_v29 = vrot.slane %v3808_v26, %v3801_v36 }
 0x21b   : > { %1315 = vmatpush1.bf16.msra.mxu1 %v2919_v30  ;;  %v918_v30 = vrot.slane %v3808_v26, %v917_v27  ;;  %v3030_v27 = vld [vmem:[#allocation11 + $0x70] sm:$0xff]  }
 0x21c   : > { %2580 = vmatprep.subr.bf16.mxu1 %v3018_v18  ;;  %v3012_v18 = vld [vmem:[#allocation10 + $0x1e0] ss:$8 sps:$4 sm:$0xff]  }
 0x2b1   : > { %v826_v39 = vpop.f32.mrb[0].mxu1 }
 0x2b2   : > { %v827_v40 = vadd.f32 %v826_v39, %v705_v37  ;;  %v828_v41 = vpop.f32.mrb[1].mxu1 }
 0x2b3   : > { %v829_v42 = vadd.f32 %v828_v41, %v709_v38  ;;  %v830_v43 = vpop.f32.mrb[2].mxu1 }
 0x2b4   : > { %3052 = vtanh.f32 %v827_v40  ;;  %v831_v44 = vpop.f32.mrb[3].mxu1 }
 0x2b5   : > { %3054 = vtanh.f32 %v829_v42 }
 0x2be   : > { %v3053_v45 = vpop.eup %3052 }
 0x2bf   : > { %v3055_v46 = vpop.eup %3054  ;;  %v835_v49 = vpack.c.bf16 %v3053_v45, %v3053_v45 }
 0x2c0   : > { %v836_v47 = vpack.c.bf16 %v3055_v46, %v3055_v46 }
 0x2c2   : > { %1275 = vmatprep.mubr.bf16.mxu0 %v836_v47  ;;  %1316 = vmatprep.mubr.bf16.mxu1 %v836_v47 }
 0x2c3   : > { %1276 = vmatmul.mubr.bf16.vlgmr.msra.gmra.mrb[4].mxu0 %v835_v49  ;;  %1317 = vmatmul.mubr.bf16.vlgmr.msra.gmra.mrb[4].mxu1 %v835_v49  ;;  %v2970_v49 = vld [vmem:[#allocation10 + $0x100] ss:$8 sps:$4 sm:$0xff]  }
 0x2c4   : > { %1730 = vmatpush1.bf16.msra.mxu0 %v2922_v48  ;;  %2581 = vmatpush3.bf16.msra.mxu1 %v3019_v19  ;;  %v3017_v19 = vld [vmem:[#allocation10 + $0x1f4] ss:$8 sps:$4 sm:$0xff]  }
 0x2c5   : > { %1731 = vmatprep.subr.bf16.mxu0 %v2927_v50  ;;  %2582 = vmatprep.subr.bf16.mxu1 %v3020_v20  ;;  %v3015_v20 = vld [vmem:[#allocation10 + $0x1f0] ss:$8 sps:$4 sm:$0xff]  }
 0x2c8   : > { %1732 = vmatpush1.bf16.msra.mxu0 %v2925_v51  ;;  %2583 = vmatpush3.bf16.msra.mxu1 %v3021_v21  ;;  %v2975_v51 = vld [vmem:[#allocation10 + $0x114] ss:$8 sps:$4 sm:$0xff]  }
 0x2c9   : > { %1733 = vmatprep.subr.bf16.mxu0 %v2930_v52  ;;  %2584 = vmatprep.subr.bf16.mxu1 %v3022_v22 }
 0x2cc   : > { %1734 = vmatpush1.bf16.msra.mxu0 %v2928_v53  ;;  %2585 = vmatpush3.bf16.msra.mxu1 %v3023_v23  ;;  %v2973_v53 = vld [vmem:[#allocation10 + $0x110] ss:$8 sps:$4 sm:$0xff]   ;;  %v3026_v23 = vld [vmem:[#allocation11 + $0x60] sm:$0xff]  }
 0x2cd   : > { %1735 = vmatprep.subr.bf16.mxu0 %v2933_v54  ;;  %2586 = vmatprep.subr.bf16.mxu1 %v3024_v24  ;;  %v2978_v54 = vld [vmem:[#allocation10 + $0x124] ss:$8 sps:$4 sm:$0xff]  }
 0x2ce   : > { %v3027_v24 = vld [vmem:[#allocation11 + $0x20] sm:$0xff]  }
 0x2d0   : > { %1736 = vmatpush1.bf16.msra.mxu0 %v2931_v55  ;;  %2587 = vmatpush3.bf16.msra.mxu1 %v3025_v25  ;;  %v2976_v55 = vld [vmem:[#allocation10 + $0x120] ss:$8 sps:$4 sm:$0xff]  }
 0x2d1   : > { %1737 = vmatprep.subr.bf16.mxu0 %v2936_v56  ;;  %v2981_v56 = vld [vmem:[#allocation10 + $0x134] ss:$8 sps:$4 sm:$0xff]   ;;  %2588 = vmatprep.subr.bf16.mxu1 %v3026_v23  ;;  %v3028_v25 = vld [vmem:[#allocation11 + $0x68] sm:$0xff]  }
 0x2d4   : > { %1738 = vmatpush1.bf16.msra.mxu0 %v2934_v57  ;;  %v2979_v57 = vld [vmem:[#allocation10 + $0x130] ss:$8 sps:$4 sm:$0xff]   ;;  %2589 = vmatpush3.bf16.msra.mxu1 %v3027_v24 }
 0x2d5   : > { %1739 = vmatprep.subr.bf16.mxu0 %v2939_v58  ;;  %v2984_v58 = vld [vmem:[#allocation10 + $0x144] ss:$8 sps:$4 sm:$0xff]   ;;  %2590 = vmatprep.subr.bf16.mxu1 %v3028_v25 }
 0x2d8   : > { %1740 = vmatpush1.bf16.msra.mxu0 %v2937_v59  ;;  %v2982_v59 = vld [vmem:[#allocation10 + $0x140] ss:$8 sps:$4 sm:$0xff]  }
 0x2d9   : > { %1741 = vmatprep.subr.bf16.mxu0 %v2942_v60  ;;  %v2987_v60 = vld [vmem:[#allocation10 + $0x154] ss:$8 sps:$4 sm:$0xff]  }
 0x2dc   : > { %1742 = vmatpush1.bf16.msra.mxu0 %v2940_v61  ;;  %v2985_v61 = vld [vmem:[#allocation10 + $0x150] ss:$8 sps:$4 sm:$0xff]  }
 0x2dd   : > { %1743 = vmatprep.subr.bf16.mxu0 %v2945_v62  ;;  %v2990_v62 = vld [vmem:[#allocation10 + $0x164] ss:$8 sps:$4 sm:$0xff]  }
 0x2e0   : > { %1744 = vmatpush1.bf16.msra.mxu0 %v2943_v63  ;;  %v2988_v63 = vld [vmem:[#allocation10 + $0x160] ss:$8 sps:$4 sm:$0xff]  }
 0x2e1   : > { %1745 = vmatprep.subr.bf16.mxu0 %v2948_v1  ;;  %v2993_v1 = vld [vmem:[#allocation10 + $0x174] ss:$8 sps:$4 sm:$0xff]  }
 0x2e4   : > { %1746 = vmatpush1.bf16.msra.mxu0 %v2946_v2  ;;  %v2991_v2 = vld [vmem:[#allocation10 + $0x170] ss:$8 sps:$4 sm:$0xff]  }
 0x2e5   : > { %1747 = vmatprep.subr.bf16.mxu0 %v2951_v3  ;;  %v2996_v3 = vld [vmem:[#allocation10 + $0x184] ss:$8 sps:$4 sm:$0xff]  }
 0x2e8   : > { %1748 = vmatpush1.bf16.msra.mxu0 %v2949_v4  ;;  %v2994_v4 = vld [vmem:[#allocation10 + $0x180] ss:$8 sps:$4 sm:$0xff]  }
 0x2e9   : > { %1749 = vmatprep.subr.bf16.mxu0 %v2954_v5  ;;  %v2999_v5 = vld [vmem:[#allocation10 + $0x194] ss:$8 sps:$4 sm:$0xff]  }
 0x2ec   : > { %1750 = vmatpush1.bf16.msra.mxu0 %v2952_v6  ;;  %v2997_v6 = vld [vmem:[#allocation10 + $0x190] ss:$8 sps:$4 sm:$0xff]  }
 0x2ed   : > { %1751 = vmatprep.subr.bf16.mxu0 %v2957_v7  ;;  %v3002_v7 = vld [vmem:[#allocation10 + $0x1a4] ss:$8 sps:$4 sm:$0xff]  }
 0x2f0   : > { %1752 = vmatpush1.bf16.msra.mxu0 %v2955_v8  ;;  %v913_v8 = vsub.s32 2, %v3792_v33  ;;  %v3014_v33 = vld [vmem:[#allocation10 + $0x1e4] ss:$8 sps:$4 sm:$0xff]  }
 0x2f1   : > { %1753 = vmatprep.subr.bf16.mxu0 %v2960_v9  ;;  %v3000_v9 = vld [vmem:[#allocation10 + $0x1a0] ss:$8 sps:$4 sm:$0xff]  }
 0x2f4   : > { %1754 = vmatpush1.bf16.msra.mxu0 %v2958_v10  ;;  %v3005_v10 = vld [vmem:[#allocation10 + $0x1b4] ss:$8 sps:$4 sm:$0xff]  }
 0x2f5   : > { %1755 = vmatprep.subr.bf16.mxu0 %v2963_v11  ;;  %v914_v11 = vrot.slane %v3808_v26, %v913_v8  ;;  %v3029_v26 = vld [vmem:[#allocation11 + $0x28] sm:$0xff]  }
 0x2f6   : > { %2591 = vmatpush3.bf16.msra.mxu1 %v3029_v26 }
 0x2f7   : > { %2592 = vmatprep.subr.bf16.mxu1 %v3030_v27 }
 0x2f8   : > { %1756 = vmatpush1.bf16.msra.mxu0 %v2961_v12  ;;  %v3003_v12 = vld [vmem:[#allocation10 + $0x1b0] ss:$8 sps:$4 sm:$0xff]  }
 0x2f9   : > { %1757 = vmatprep.subr.bf16.mxu0 %v2966_v13  ;;  %v3008_v13 = vld [vmem:[#allocation10 + $0x1c4] ss:$8 sps:$4 sm:$0xff]  }
 0x2fc   : > { %1758 = vmatpush1.bf16.msra.mxu0 %v2964_v14 }
 0x2fd   : > { %1759 = vmatprep.subr.bf16.mxu0 %v2969_v15  ;;  %v3006_v15 = vld [vmem:[#allocation10 + $0x1c0] ss:$8 sps:$4 sm:$0xff]  }
 0x300   : > { %1760 = vmatpush1.bf16.msra.mxu0 %v2967_v16  ;;  %v3011_v16 = vld [vmem:[#allocation10 + $0x1d4] ss:$8 sps:$4 sm:$0xff]  }
 0x301   : > { %1770 = vmatprep.subr.bf16.mxu0 %v2972_v17  ;;  %v3009_v17 = vld [vmem:[#allocation10 + $0x1d0] ss:$8 sps:$4 sm:$0xff]  }
 0x396   : > { %v1277_v31 = vpop.f32.mrb[4].mxu0  ;;  %v3816_v32 = vpop.f32.mrb[4].mxu1 }
 0x397   : > { %v1278_v35 = vadd.f32 %v1277_v31, %v906_v28  ;;  %v1279_v37 = vpop.f32.mrb[5].mxu0  ;;  %v1320_v38 = vpop.f32.mrb[5].mxu1  ;;  %v1319_v14 = vadd.f32 %v3816_v32, %v914_v11  ;;  %v3031_v28 = vld [vmem:[#allocation11 + $0x30] sm:$0xff]   ;;  %v1397_v31 = vld [vmem:[%s3959_s30] sm:$0x3]  ;;  %s2231_s30 = sshll.u32 %s611_s23, 4  ;;  %s3863_s30 = int_to_ptr.vmem [resolvable:$true] %s2231_s30 }
 0x398   : > { %v1280_v39 = vadd.f32 %v1279_v37, %v910_v29  ;;  %v1321_v40 = vadd.f32 %v1320_v38, %v918_v30  ;;  %v1281_v41 = vpop.f32.mrb[6].mxu0  ;;  %v1322_v42 = vpop.f32.mrb[6].mxu1  ;;  %2593 = vmatpush3.bf16.msra.mxu1 %v3031_v28  ;;  %v3032_v29 = vld [vmem:[#allocation11 + $0x78] sm:$0xff]   ;;  %v1402_v32 = vrot.slane %v1397_v31, %v3795_v34  ;;  %v3036_v34 = vld [vmem:[#allocation13 + $0x10] sm:$0xff]   ;;  %s3298_s15 = scalar_lea.vmem %s3863_s30, 128 }
 0x399   : > { %v1282_v43 = vpop.f32.mrb[7].mxu0  ;;  %v1323_v44 = vpop.f32.mrb[7].mxu1  ;;  %3056 = vtanh.f32 %v1278_v35  ;;  %v3033_v30 = vld [vmem:[#allocation11 + $0x38] sm:$0xff]   ;;  %2594 = vmatprep.subr.bf16.mxu1 %v3032_v29  ;;  %v1406_v35 = vrot.slane %v1397_v31, %v3801_v36  ;;  %p3299_p10 = scmp.ne.s32.totalorder %s3863_s30, %s3298_s15 }
 0x39a   : > { %3058 = vtanh.f32 %v1280_v39  ;;  %v3037_v36 = vld [vmem:[#allocation13 + $0x18] sm:$0xff]  }
 0x39b   : > { %3060 = vtanh.f32 %v1321_v40  ;;  %p3300_p11 = pnand %p3299_p10, %p3964_p1 }
 0x39c   : > { %3062 = vtanh.f32 %v1319_v14  ;;  %2595 = vmatpush3.bf16.msra.mxu1 %v3033_v30 }
 0x39d   : > { %2628 = vmatprep.subr.bf16.mxu1 %v3396_v0  ;;  %p3301_p12 = pneg %p3300_p11 }
 0x3a3   : > { %v3057_v45 = vpop.eup %3056 }
 0x3a4   : > { %v3059_v46 = vpop.eup %3058  ;;  %v1329_v50 = vpack.c.bf16 %v3057_v45, %v3057_v45 }
 0x3a5   : > { %v3061_v47 = vpop.eup %3060  ;;  %v1330_v48 = vpack.c.bf16 %v3059_v46, %v3059_v46  ;;  %v3034_v46 = vld [vmem:[#allocation13] sm:$0xff]  }
 0x3a6   : > { %v1332_v52 = vpack.c.bf16 %v3061_v47, %v3061_v47  ;;  %v3063_v21 = vpop.eup %3062 }
 0x3a7   : > { %1761 = vmatprep.mubr.bf16.mxu0 %v1330_v48  ;;  %v1331_v22 = vpack.c.bf16 %v3063_v21, %v3063_v21  ;;  %v3035_v48 = vld [vmem:[#allocation13 + $0x8] sm:$0xff]  }
 0x3a8   : > { %1762 = vmatmul.mubr.bf16.vlgmr.msra.gmra.mrb[8].mxu0 %v1329_v50  ;;  %v3039_v50 = vld [vmem:[#allocation13 + $0x28] sm:$0xff]  }
 0x3a9   : > { %1771 = vmatpush1.bf16.msra.mxu0 %v2970_v49  ;;  %1802 = vmatprep.mubr.bf16.mxu0 %v1332_v52  ;;  %v3038_v49 = vld [vmem:[#allocation13 + $0x20] sm:$0xff]   ;;  %v3041_v52 = vld [vmem:[#allocation13 + $0x38] sm:$0xff]  }
 0x3aa   : > { %1772 = vmatprep.subr.bf16.mxu0 %v2975_v51  ;;  %v3040_v51 = vld [vmem:[#allocation13 + $0x30] sm:$0xff]  }
 0x3ad   : > { %1773 = vmatpush1.bf16.msra.mxu0 %v2973_v53 }
 0x3ae   : > { %1774 = vmatprep.subr.bf16.mxu0 %v2978_v54  ;;  %v2538_v54 = vld [vmem:[%s3960_s29] ss:$0 sm:$0xff]  ;;  %s3963_s29 = sld [smem:[#allocation30_spill]] }
 0x3b1   : > { %1775 = vmatpush1.bf16.msra.mxu0 %v2976_v55 }
 0x3b2   : > { %1776 = vmatprep.subr.bf16.mxu0 %v2981_v56 }
 0x3b4   : > { %s3861_s10 = scalar_lea.hbm %s3963_s29, %s2574_s1 }
 0x3b5   : > { %1777 = vmatpush1.bf16.msra.mxu0 %v2979_v57 }
 0x3b6   : > { %1778 = vmatprep.subr.bf16.mxu0 %v2984_v58 }
 0x3b9   : > { %1779 = vmatpush1.bf16.msra.mxu0 %v2982_v59 }
 0x3ba   : > { %1780 = vmatprep.subr.bf16.mxu0 %v2987_v60 }
 0x3bd   : > { %1781 = vmatpush1.bf16.msra.mxu0 %v2985_v61  ;;  %v3042_v61 = vld [vmem:[#allocation14] sm:$0xff]  }
 0x3be   : > { %1782 = vmatprep.subr.bf16.mxu0 %v2990_v62 }
 0x3c1   : > { %1783 = vmatpush1.bf16.msra.mxu0 %v2988_v63  ;;  %v3043_v63 = vld [vmem:[#allocation14 + $0x8] sm:$0xff]  }
 0x3c2   : > { %1784 = vmatprep.subr.bf16.mxu0 %v2993_v1  ;;  %v3044_v1 = vld [vmem:[#allocation14 + $0x10] sm:$0xff]  }
 0x3c5   : > { %1785 = vmatpush1.bf16.msra.mxu0 %v2991_v2  ;;  %v3045_v2 = vld [vmem:[#allocation14 + $0x18] sm:$0xff]  }
 0x3c6   : > { %1786 = vmatprep.subr.bf16.mxu0 %v2996_v3  ;;  %v3046_v3 = vld [vmem:[#allocation14 + $0x20] sm:$0xff]  }
 0x3c9   : > { %1787 = vmatpush1.bf16.msra.mxu0 %v2994_v4  ;;  %v3047_v4 = vld [vmem:[#allocation14 + $0x28] sm:$0xff]  }
 0x3ca   : > { %1788 = vmatprep.subr.bf16.mxu0 %v2999_v5  ;;  %v3048_v5 = vld [vmem:[#allocation14 + $0x30] sm:$0xff]  }
 0x3cd   : > { %1789 = vmatpush1.bf16.msra.mxu0 %v2997_v6  ;;  %v3049_v6 = vld [vmem:[#allocation14 + $0x38] sm:$0xff]  }
 0x3ce   : > { %1790 = vmatprep.subr.bf16.mxu0 %v3002_v7  ;;  %v2555_v7 = vld [vmem:[%s3961_s22] ss:$0 sm:$0xff]  ;;  %s3302_s22 = sshll.u32 %s3399_s6, 4  ;;  %s3303_s22 = int_to_ptr.vmem [resolvable:$false] %s3302_s22 }
 0x3cf   : > { %s3304_s28 = scalar_lea.vmem %s3303_s22, 256  ;;  %p3305_p13 = scmp.lt.s32.totalorder %s3863_s30, %s3303_s22 }
 0x3d0   : > { %p3306_p3 = scmp.lt.s32.totalorder %s3304_s28, %s3298_s15 }
 0x3d1   : > { %1791 = vmatpush1.bf16.msra.mxu0 %v3000_v9 }
 0x3d2   : > { %1792 = vmatprep.subr.bf16.mxu0 %v3005_v10  ;;  %p3307_p6 = por %p3306_p3, %p3305_p13 }
 0x3d4   : > { %p3308_p9 = pnand %p3307_p6, %p3301_p12 }
 0x3d5   : > { %1793 = vmatpush1.bf16.msra.mxu0 %v3003_v12 }
 0x3d6   : > { %1794 = vmatprep.subr.bf16.mxu0 %v3008_v13 }
 0x3d9   : > { %1795 = vmatpush1.bf16.msra.mxu0 %v3006_v15 }
 0x3da   : > { %1796 = vmatprep.subr.bf16.mxu0 %v3011_v16 }
 0x3dd   : > { %1797 = vmatpush1.bf16.msra.mxu0 %v3009_v17 }
 0x3de   : > { %1798 = vmatprep.subr.bf16.mxu0 %v3014_v33 }
 0x3e1   : > { %1799 = vmatpush1.bf16.msra.mxu0 %v3012_v18 }
 0x3e2   : > { %1800 = vmatprep.subr.bf16.mxu0 %v3017_v19 }
 0x3e5   : > { %1801 = vmatpush1.bf16.msra.mxu0 %v3015_v20 }
 0x3e8   : > { %1803 = vmatmul.mubr.bf16.vlgmr.msra.gmra.mrb[8].mxu0 %v1331_v22 }
 0x4bb   : > { %v1804_v37 = vpop.f32.mrb[8].mxu0 }
 0x4bc   : > { %v2668_v38 = vadd.f32 %v1804_v37, %v1402_v32  ;;  %v1806_v39 = vpop.f32.mrb[9].mxu0 }
 0x4bd   : > { %v2669_v40 = vadd.f32 %v1806_v39, %v1406_v35  ;;  %v1808_v41 = vpop.f32.mrb[10].mxu0 }
 0x4be   : > { %3064 = vtanh.f32 %v2668_v38  ;;  %v1809_v42 = vpop.f32.mrb[11].mxu0 }
 0x4bf   : > { %3066 = vtanh.f32 %v2669_v40 }
 0x4c8   : > { %v3065_v43 = vpop.eup %3064 }
 0x4c9   : > { %v3067_v44 = vpop.eup %3066  ;;  %v1813_v47 = vpack.c.bf16 %v3065_v43, %v3065_v43 }
 0x4ca   : > { %v1814_v45 = vpack.c.bf16 %v3067_v44, %v3067_v44 }
 0x4cc   : > { %1982 = vmatprep.mubr.bf16.mxu1 %v1814_v45 }
 0x4cd   : > { %1983 = vmatmul.mubr.bf16.vlgmr.msra.gmra.mrb[8].mxu1 %v1813_v47 }
 0x4ce   : > { %2629 = vmatpush3.bf16.msra.mxu1 %v3034_v46  ;;  %2644 = vmatprep.mubr.msk.bf16.mxu1 %vm3397_vm0, %v3396_v0 }
 0x4cf   : > { %2630 = vmatprep.subr.bf16.mxu1 %v3396_v0 }
 0x4d2   : > { %2631 = vmatpush3.bf16.msra.mxu1 %v3035_v48 }
 0x4d3   : > { %2632 = vmatprep.subr.bf16.mxu1 %v3396_v0 }
 0x4d6   : > { %2633 = vmatpush3.bf16.msra.mxu1 %v3036_v34 }
 0x4d7   : > { %2634 = vmatprep.subr.bf16.mxu1 %v3396_v0 }
 0x4da   : > { %2635 = vmatpush3.bf16.msra.mxu1 %v3037_v36 }
 0x4db   : > { %2636 = vmatprep.subr.bf16.mxu1 %v3396_v0 }
 0x4de   : > { %2637 = vmatpush3.bf16.msra.mxu1 %v3038_v49 }
 0x4df   : > { %2638 = vmatprep.subr.bf16.mxu1 %v3396_v0 }
 0x4e2   : > { %2639 = vmatpush3.bf16.msra.mxu1 %v3039_v50 }
 0x4e3   : > { %2640 = vmatprep.subr.bf16.mxu1 %v3396_v0 }
 0x4e6   : > { %2641 = vmatpush3.bf16.msra.mxu1 %v3040_v51 }
 0x4e7   : > { %2642 = vmatprep.subr.bf16.mxu1 %v3396_v0 }
 0x4ea   : > { %2643 = vmatpush3.bf16.msra.mxu1 %v3041_v52 }
 0x4eb   : > { %2648 = vmatprep.subr.bf16.mxu1 %v3396_v0 }
 0x5a0   : > { %v2596_v53 = vpop.f32.mrb[8].mxu1 }
 0x5a1   : > { %v2597_v55 = vpop.f32.mrb[9].mxu1 }
 0x5a2   : > { %v2598_v56 = vadd.f32 %v2597_v55, %v2596_v53  ;;  %v2599_v57 = vpop.f32.mrb[10].mxu1 }
 0x5a3   : > { %v2600_v58 = vpop.f32.mrb[11].mxu1 }
 0x5a4   : > { %v1985_v59 = vadd.f32 %v2598_v56, %v2538_v54 }
 0x5a6   : > { %3068 = vtanh.f32 %v1985_v59 }
 0x5b0   : > { %v3069_v60 = vpop.eup %3068 }
 0x5b1   : > { %v1991_v62 = vpack.c.bf16 %v3069_v60, %v3069_v60 }
 0x5b3   : > { %2645 = vmatmul.mubr.bf16.vlgmr.msra.gmra.mrb[12].mxu1 %v1991_v62 }
 0x5b4   : > { %2649 = vmatpush3.bf16.msra.mxu1 %v3042_v61  ;;  %2664 = vmatprep.mubr.msk.bf16.mxu1 %vm3397_vm0, %v3396_v0 }
 0x5b5   : > { %2650 = vmatprep.subr.bf16.mxu1 %v3396_v0 }
 0x5b8   : > { %2651 = vmatpush3.bf16.msra.mxu1 %v3043_v63 }
 0x5b9   : > { %2652 = vmatprep.subr.bf16.mxu1 %v3396_v0 }
 0x5bc   : > { %2653 = vmatpush3.bf16.msra.mxu1 %v3044_v1 }
 0x5bd   : > { %2654 = vmatprep.subr.bf16.mxu1 %v3396_v0 }
 0x5c0   : > { %2655 = vmatpush3.bf16.msra.mxu1 %v3045_v2 }
 0x5c1   : > { %2656 = vmatprep.subr.bf16.mxu1 %v3396_v0 }
 0x5c4   : > { %2657 = vmatpush3.bf16.msra.mxu1 %v3046_v3 }
 0x5c5   : > { %2658 = vmatprep.subr.bf16.mxu1 %v3396_v0 }
 0x5c8   : > { %2659 = vmatpush3.bf16.msra.mxu1 %v3047_v4 }
 0x5c9   : > { %2660 = vmatprep.subr.bf16.mxu1 %v3396_v0 }
 0x5cc   : > { %2661 = vmatpush3.bf16.msra.mxu1 %v3048_v5 }
 0x5cd   : > { %2662 = vmatprep.subr.bf16.mxu1 %v3396_v0  ;;  %v2564_v0 = vld [vmem:[%s3962_s14] ss:$0 sm:$0xff] }
 0x5d0   : > { %2663 = vmatpush3.bf16.msra.mxu1 %v3049_v6 }
 0x686   : > { %v2097_v8 = vpop.f32.mrb[12].mxu1 }
 0x687   : > { %v2098_v9 = vadd.f32 %v2555_v7, %v2097_v8  ;;  %v2646_v10 = vpop.f32.mrb[13].mxu1 }
 0x688   : > { %v2100_v11 = vpop.f32.mrb[14].mxu1 }
 0x689   : > { %3070 = vtanh.f32 %v2098_v9  ;;  %v2647_v12 = vpop.f32.mrb[15].mxu1 }
 0x693   : > { %v3071_v13 = vpop.eup %3070 }
 0x694   : > { %v2104_v14 = vpack.c.bf16 %v3071_v13, %v3071_v13 }
 0x696   : > { %2665 = vmatmul.mubr.bf16.vlgmr.msra.gmra.mrb[16].mxu1 %v2104_v14 }
 0x769   : > { %v2210_v15 = vpop.f32.mrb[16].mxu1 }
 0x76a   : > { %v2211_v16 = vadd.f32 %v2564_v0, %v2210_v15  ;;  %v2666_v17 = vpop.f32.mrb[17].mxu1 }
 0x76b   : > { %v2213_v33 = vpop.f32.mrb[18].mxu1 }
 0x76c   : > { %2216 = vst [vmem:[%s611_s23] sm:$0xff] %v2211_v16  ;;  %v2667_v18 = vpop.f32.mrb[19].mxu1 }
 0x76d   : > { %3311 = shalt.err (!%p3308_p9)
}
 0x76e   : > { %s3312_s16 = scalar_lea.hbm %s3861_s10, 128  ;;  %s3316_s1 = scalar_lea.hbm %s3963_s29, 256 }
 0x76f   : > { %p3313_p4 = scmp.ne.s32.totalorder %s3861_s10, %s3312_s16  ;;  %p3317_p5 = scmp.lt.u32.totalorder %s3861_s10, %s3963_s29 }
 0x770   : > { %p3318_p2 = scmp.lt.u32.totalorder %s3316_s1, %s3312_s16  ;;  %p3320_p10 = scmp.lt.u32.totalorder %s3312_s16, %s3861_s10 }
 0x771   : > { %p3314_p8 = pnand %p3313_p4, %p3964_p1 }
 0x772   : > { %p3319_p7 = por %p3318_p2, %p3317_p5 }
 0x773   : > { %p3315_p0 = pneg %p3314_p8 }
 0x774   : > { %p3321_p11 = por %p3320_p10, %p3319_p7 }
 0x776   : > { %p3322_p12 = pnand %p3321_p11, %p3315_p0 }
 0x778   : > { %3325 = shalt.err (!%p3322_p12)
}
 0x779   : > { %2704 = dma.vmem_to_hbm [thread:$0]  (%p3964_p1), %s3863_s30, 128, %s3861_s10, %s2218_s24  }
 0x77a PF: > { %s2243_s25 = sand.u32 1, %s3368_s18   ;;  %p3965_p13 = scmp.ne.s32.totalorder %s3946_s12, 0 }
 0x77b   : > { %p3966_p3 = scmp.ge.s32.totalorder %s3380_s21, 2  ;;  %s2244_s15 = scalar_lea.sflag [#allocation4], %s2243_s25 }
 0x77d   : > { %p2733_p6 = pnand %p3966_p3, %p3965_p13 }
 0x77f   : > { %3363 = dma.done.wait (!%p2733_p6), %s2244_s15, 128  }
 0x780   : > { %3365 = vsyncadd (!%p2733_p6), %s2244_s15, 4294967168  ;;  %p32_p9 = scmp.ge.s32.totalorder %s3689_s26, 4   ;;  %s3967_s18 = smov %s3372_s19 }
 0x781   : > { %s3968_s19 = smov %s3376_s20  ;;  %s3969_s20 = smov %s3701_s17 }
 0x782   : > { %s3970_s21 = smov %s3689_s26  ;;  %34 = sbr.rel (!%p32_p9) target bundleno = 18 (0x12), region = 153 }
 0x789   :  { %2249 = vsyncpa [#allocation3], 1 }
 0x78a   :  { %2251 = vsyncpa [#allocation3 + $0x1], 1 }
 0x78b   :  { %2252 = vsyncpa [#allocation6], 1 }
 0x78c   :  { %2253 = vsyncpa [#allocation9], 1 }
 0x78d   :  { %2254 = vsyncpa [#allocation12], 1 }
 0x78e   :  { %2255 = vsyncpa [#allocation15], 1 }
 0x78f   :  { %2256 = vsyncpa [#allocation4], 1 }
 0x790   :  { %2258 = vsyncpa [#allocation4 + $0x1], 1 }

</bundles_post_ra>
